<compile_context>
chip_gen: v6e
topology: v6e:2x2x1
jax: 0.10.0
libtpu: 0.0.40
codegen_flags: <defaults>
</compile_context>

<pallas_src>
import math
from functools import partial

import jax
import jax.numpy as jnp
from jax.experimental import pallas as pl
from jax.experimental.pallas import tpu as pltpu


# ------------------------------ tiling helpers ------------------------------

def _pick_tile(dim, preferred, align):
    """Largest tile <= preferred that divides `dim` and is `align`-aligned,
    falling back to the full dimension (always a legal block shape)."""
    if dim <= preferred:
        return dim
    t = (preferred // align) * align
    while t >= align:
        if dim % t == 0:
            return t
        t -= align
    return dim


_VMEM_CAP = None


def _vmem_limit_bytes():
    """~75% of physical VMEM: 96 MiB on v5e/v6e (128 MiB), 48 MiB on v7x (64 MiB)."""
    global _VMEM_CAP
    if _VMEM_CAP is None:
        cap = 64 * 1024 * 1024
        try:
            cap = int(pltpu.get_tpu_info().vmem_capacity_bytes)
        except Exception:
            pass
        _VMEM_CAP = cap
    return min(int(_VMEM_CAP * 3 // 4), 100 * 1024 * 1024)


def _mosaic_params(dims):
    return pltpu.CompilerParams(
        dimension_semantics=dims,
        vmem_limit_bytes=_vmem_limit_bytes(),
    )


# ----------------------------- Pallas kernels ------------------------------

def _linear_kernel(x_ref, w_ref, b_ref, o_ref, *, activation):
    # Full-K contraction: grid = (M//tm, N//tn), no accumulator needed.
    y = jnp.dot(x_ref[...], w_ref[...], preferred_element_type=jnp.float32)
    y = y + b_ref[...].astype(jnp.float32)
    if activation == "gelu":
        # TODO(synk): PyTorch nn.GELU defaults to exact erf; tanh approx used here.
        y = jax.nn.gelu(y)
    o_ref[...] = y.astype(o_ref.dtype)


def _linear_res_ln_kernel(x_ref, w_ref, b_ref, res_ref, g_ref, be_ref,
                          o_ref, *, eps):
    # o = LayerNorm(res + x @ w + b); grid = (M//tm,), full K and N resident.
    y = jnp.dot(x_ref[...], w_ref[...], preferred_element_type=jnp.float32)
    y = (y + b_ref[...].astype(jnp.float32)
         + res_ref[...].astype(jnp.float32))
    mu = jnp.mean(y, axis=-1, keepdims=True)
    var = jnp.mean((y - mu) * (y - mu), axis=-1, keepdims=True)
    yn = (y - mu) * jax.lax.rsqrt(var + eps)
    o_ref[...] = (yn * g_ref[...].astype(jnp.float32)
                  + be_ref[...].astype(jnp.float32)).astype(o_ref.dtype)


def _ln_kernel(x_ref, g_ref, b_ref, o_ref, *, eps):
    x = x_ref[...].astype(jnp.float32)
    mu = jnp.mean(x, axis=-1, keepdims=True)
    var = jnp.mean((x - mu) * (x - mu), axis=-1, keepdims=True)
    y = (x - mu) * jax.lax.rsqrt(var + eps)
    o_ref[...] = (y * g_ref[...].astype(jnp.float32)
                  + b_ref[...].astype(jnp.float32)).astype(o_ref.dtype)


def _attn_kernel(q_ref, k_ref, v_ref, o_ref, *, scale):
    # grid = (BH//g, S//tq); K/V blocks are full-S, indexed only by the head
    # group, so they stay resident across all q-tiles of that group.
    # 1/sqrt(Dh) folded into Q at load (tq*Dh mults instead of tq*S).
    q = q_ref[...] * scale
    s = jnp.einsum("bqd,bkd->bqk", q, k_ref[...],
                   preferred_element_type=jnp.float32)
    m = jnp.max(s, axis=-1, keepdims=True)
    p = jnp.exp(s - m)
    l = jnp.sum(p, axis=-1, keepdims=True)
    o = jnp.einsum("bqk,bkd->bqd", p.astype(v_ref.dtype), v_ref[...],
                   preferred_element_type=jnp.float32)
    o_ref[...] = (o / l).astype(o_ref.dtype)


def _lse_logits_kernel(x_ref, w_ref, b_ref, logits_ref, lse_ref, m_ref, l_ref):
    # Pass 1 of LM head: grid = (M//tm, Vp//tv); writes bf16 logits every step
    # and an online log-sum-exp (over the bf16-rounded logits, so pass 2 sums
    # to exactly 1) once per row tile.
    j = pl.program_id(1)

    @pl.when(j == 0)
    def _():
        m_ref[...] = jnp.full(m_ref.shape, -jnp.inf, jnp.float32)
        l_ref[...] = jnp.zeros_like(l_ref)

    y = jnp.dot(x_ref[...], w_ref[...], preferred_element_type=jnp.float32)
    y = y + b_ref[...].astype(jnp.float32)
    yb = y.astype(jnp.bfloat16)
    logits_ref[...] = yb

    yf = yb.astype(jnp.float32)
    m_prev = m_ref[...]
    m_new = jnp.maximum(m_prev, yf.max(axis=-1, keepdims=True))
    l_ref[...] = (jnp.exp(m_prev - m_new) * l_ref[...]
                  + jnp.exp(yf - m_new).sum(axis=-1, keepdims=True))
    m_ref[...] = m_new

    @pl.when(j == pl.num_programs(1) - 1)
    def _():
        lse_ref[...] = m_ref[...] + jnp.log(l_ref[...])


def _logp_kernel(logits_ref, lse_ref, o_ref):
    # Pass 2: pure elementwise bf16-logit spill minus LSE (no matmul recompute).
    o_ref[...] = logits_ref[...].astype(jnp.float32) - lse_ref[...]


# ------------------------------ kernel wrappers -----------------------------

def linear(x, w, b, activation=None, out_dtype=jnp.bfloat16, tm=512, tn=1024):
    M, K = x.shape
    _, N = w.shape
    tm = _pick_tile(M, tm, 8)
    tn = _pick_tile(N, tn, 128)
    grid = (M // tm, N // tn)
    return pl.pallas_call(
        partial(_linear_kernel, activation=activation),
        out_shape=jax.ShapeDtypeStruct((M, N), out_dtype),
        grid=grid,
        in_specs=[
            pl.BlockSpec((tm, K), lambda i, j: (i, 0)),
            pl.BlockSpec((K, tn), lambda i, j: (0, j)),
            pl.BlockSpec((1, tn), lambda i, j: (0, j)),
        ],
        out_specs=pl.BlockSpec((tm, tn), lambda i, j: (i, j)),
        compiler_params=_mosaic_params(("parallel", "parallel")),
    )(x, w, b.reshape(1, N))


def linear_res_layernorm(x, w, b, res, gamma, beta, eps=1e-5,
                         out_dtype=jnp.bfloat16, tm=512):
    M, K = x.shape
    _, N = w.shape
    tm = _pick_tile(M, tm, 8)
    grid = (M // tm,)
    return pl.pallas_call(
        partial(_linear_res_ln_kernel, eps=eps),
        out_shape=jax.ShapeDtypeStruct((M, N), out_dtype),
        grid=grid,
        in_specs=[
            pl.BlockSpec((tm, K), lambda i: (i, 0)),
            pl.BlockSpec((K, N), lambda i: (0, 0)),
            pl.BlockSpec((1, N), lambda i: (0, 0)),
            pl.BlockSpec((tm, N), lambda i: (i, 0)),
            pl.BlockSpec((1, N), lambda i: (0, 0)),
            pl.BlockSpec((1, N), lambda i: (0, 0)),
        ],
        out_specs=pl.BlockSpec((tm, N), lambda i: (i, 0)),
        compiler_params=_mosaic_params(("parallel",)),
    )(x, w, b.reshape(1, N), res, gamma.reshape(1, N), beta.reshape(1, N))


def layer_norm(x, gamma, beta, eps=1e-5, out_dtype=jnp.bfloat16, tm=1024):
    M, D = x.shape
    tm = _pick_tile(M, tm, 8)
    return pl.pallas_call(
        partial(_ln_kernel, eps=eps),
        out_shape=jax.ShapeDtypeStruct((M, D), out_dtype),
        grid=(M // tm,),
        in_specs=[
            pl.BlockSpec((tm, D), lambda i: (i, 0)),
            pl.BlockSpec((1, D), lambda i: (0, 0)),
            pl.BlockSpec((1, D), lambda i: (0, 0)),
        ],
        out_specs=pl.BlockSpec((tm, D), lambda i: (i, 0)),
        compiler_params=_mosaic_params(("parallel",)),
    )(x, gamma.reshape(1, D), beta.reshape(1, D))


def attention(q, k, v, heads_per_block=8, tq=256):
    """q, k, v: (B*H, S, Dh). K/V are full-S resident per head group; several
    heads are processed per grid step to amortize per-step overhead and fill
    the MXU despite the small Dh contraction."""
    BH, S, Dh = q.shape
    g = _pick_tile(BH, heads_per_block, 1)
    tq = _pick_tile(S, tq, 8)
    grid = (BH // g, S // tq)
    scale = 1.0 / math.sqrt(Dh)
    return pl.pallas_call(
        partial(_attn_kernel, scale=scale),
        out_shape=jax.ShapeDtypeStruct((BH, S, Dh), q.dtype),
        grid=grid,
        in_specs=[
            pl.BlockSpec((g, tq, Dh), lambda i, qi: (i, qi, 0)),
            pl.BlockSpec((g, S, Dh), lambda i, qi: (i, 0, 0)),
            pl.BlockSpec((g, S, Dh), lambda i, qi: (i, 0, 0)),
        ],
        out_specs=pl.BlockSpec((g, tq, Dh), lambda i, qi: (i, qi, 0)),
        compiler_params=_mosaic_params(("parallel", "parallel")),
    )(q, k, v)


def lm_head_log_softmax(x, w, b, tm=2048, tv=512):
    M, D = x.shape
    _, V = w.shape

    # Pad vocab to a multiple of the vocab tile (30522 -> 30720) so the weight
    # block is always lane-dense and never falls back to the full (D, V) block.
    Vp = ((V + tv - 1) // tv) * tv
    if Vp != V:
        w = jnp.pad(w, ((0, 0), (0, Vp - V)))
        b = jnp.pad(b, (0, Vp - V), constant_values=-1e30)  # exp() -> 0

    tm = _pick_tile(M, tm, 8)
    tvv = _pick_tile(Vp, tv, 128)
    b2 = b.reshape(1, Vp)

    # Pass 1: bf16 logits + online LSE. Large tm => the (D, Vp) weight is
    # streamed only ceil(M/tm) times.
    grid1 = (M // tm, Vp // tvv)
    # TODO(synk): on v7x add pipeline_mode=pl.Buffered(3) to the weight spec to
    # hide exposed DMA behind the shorter compute-per-byte budget.
    logits, lse = pl.pallas_call(
        _lse_logits_kernel,
        out_shape=(jax.ShapeDtypeStruct((M, Vp), jnp.bfloat16),
                   jax.ShapeDtypeStruct((M, 1), jnp.float32)),
        grid=grid1,
        in_specs=[
            pl.BlockSpec((tm, D), lambda i, j: (i, 0)),
            pl.BlockSpec((D, tvv), lambda i, j: (0, j)),
            pl.BlockSpec((1, tvv), lambda i, j: (0, j)),
        ],
        out_specs=(
            pl.BlockSpec((tm, tvv), lambda i, j: (i, j)),
            pl.BlockSpec((tm, 1), lambda i, j: (i, 0)),
        ),
        scratch_shapes=[pltpu.VMEM((tm, 1), jnp.float32),
                        pltpu.VMEM((tm, 1), jnp.float32)],
        compiler_params=_mosaic_params(("parallel", "arbitrary")),
    )(x, w, b2)

    # Pass 2: elementwise log-prob = logits - LSE (no second matmul).
    tm2 = _pick_tile(M, 1024, 8)
    tv2 = _pick_tile(Vp, 1024, 128)
    grid2 = (M // tm2, Vp // tv2)
    logp = pl.pallas_call(
        _logp_kernel,
        out_shape=jax.ShapeDtypeStruct((M, Vp), jnp.float32),
        grid=grid2,
        in_specs=[
            pl.BlockSpec((tm2, tv2), lambda i, j: (i, j)),
            pl.BlockSpec((tm2, 1), lambda i, j: (i, 0)),
        ],
        out_specs=pl.BlockSpec((tm2, tv2), lambda i, j: (i, j)),
        compiler_params=_mosaic_params(("parallel", "parallel")),
    )(logits, lse)

    if Vp != V:
        # TODO(synk): final slice copies the (M, V) f32 output once in XLA;
        # a remainder-tile (masked) pass-2 grid would avoid it.
        logp = logp[:, :V]
    return logp


# ------------------------------- BERT forward -------------------------------

def self_attention_heads(x, lp, B, S, D, H):
    Dh = D // H
    qkv = linear(x, lp["w_qkv"], lp["b_qkv"])            # (B*S, 3D) bf16, fused QKV
    # TODO(synk): head split/merge relayouts stay in XLA glue; folding them into
    # the attention BlockSpecs (indexing the (B*S, 3D) tensor directly) would
    # save ~2 full-tensor HBM passes per layer but needs sub-128 lane blocks.
    qkv = (qkv.reshape(B, S, 3, H, Dh)
              .transpose(2, 0, 3, 1, 4)
              .reshape(3, B * H, S, Dh))
    oh = attention(qkv[0], qkv[1], qkv[2])                # (B*H, S, Dh)
    return oh.reshape(B, H, S, Dh).transpose(0, 2, 1, 3).reshape(B * S, D)


def encoder_layer(x, lp, B, S, D, H):
    attn = self_attention_heads(x, lp, B, S, D, H)
    # LN(x + attn @ Wo + bo) fused into the Wo matmul epilogue.
    x = linear_res_layernorm(attn, lp["wo"], lp["bo"], x, lp["ln1_g"], lp["ln1_b"])
    h = linear(x, lp["w1"], lp["b1"], activation="gelu")
    # LN(x + h @ W2 + b2) fused into the W2 matmul epilogue.
    x = linear_res_layernorm(h, lp["w2"], lp["b2"], x, lp["ln2_g"], lp["ln2_b"])
    return x


def bert_forward(params, ids, n_head):
    B, S = ids.shape
    D = params["tok_emb"].shape[1]

    # Embedding gather kept in plain JAX glue.
    x = params["tok_emb"][ids] + params["pos_emb"][:S][None, :, :]   # (B, S, D)
    x = x.reshape(B * S, D)
    x = layer_norm(x, params["emb_ln_g"], params["emb_ln_b"])
    # TODO(synk): dropout(p) is eval-mode identity; padding/segment masks not modeled.

    for lp in params["layers"]:
        x = encoder_layer(x, lp, B, S, D, n_head)

    V = params["head_w"].shape[1]
    logp = lm_head_log_softmax(x, params["head_w"], params["head_b"])
    return logp.reshape(B, S, V)


# ----------------------------- parameter init --------------------------------

def init_params(key, vocab_size, max_len, n_layers, d_model, n_head):
    d_ff = 4 * d_model
    keys = iter(jax.random.split(key, 4 + 4 * n_layers))

    def w(shape, scale=0.02):
        return (jax.random.normal(next(keys), shape, jnp.float32) * scale
                ).astype(jnp.bfloat16)

    params = {
        "tok_emb": w((vocab_size, d_model)),
        "pos_emb": w((max_len, d_model)),
        "emb_ln_g": jnp.ones((d_model,), jnp.float32),
        "emb_ln_b": jnp.zeros((d_model,), jnp.float32),
        "head_w": w((d_model, vocab_size)),
        "head_b": jnp.zeros((vocab_size,), jnp.float32),
        "layers": [],
    }
    for _ in range(n_layers):
        lp = {
            "w_qkv": w((d_model, 3 * d_model)),          # fused Q|K|V
            "b_qkv": jnp.zeros((3 * d_model,), jnp.float32),
            "wo": w((d_model, d_model)), "bo": jnp.zeros((d_model,), jnp.float32),
            "w1": w((d_model, d_ff)),    "b1": jnp.zeros((d_ff,), jnp.float32),
            "w2": w((d_ff, d_model)),    "b2": jnp.zeros((d_model,), jnp.float32),
            "ln1_g": jnp.ones((d_model,), jnp.float32),
            "ln1_b": jnp.zeros((d_model,), jnp.float32),
            "ln2_g": jnp.ones((d_model,), jnp.float32),
            "ln2_b": jnp.zeros((d_model,), jnp.float32),
        }
        params["layers"].append(lp)
    return params


# ----------------------------------- main ------------------------------------

if __name__ == "__main__":
    vocab_size, max_len, n_layers, d_model, n_head, p = 64, 16, 2, 32, 4, 0.1
    B, S = 2, 8

    key = jax.random.PRNGKey(0)
    pkey, ikey = jax.random.split(key)
    params = init_params(pkey, vocab_size, max_len, n_layers, d_model, n_head)
    ids = jax.random.randint(ikey, (B, S), 0, vocab_size, dtype=jnp.int32)

    fwd = jax.jit(partial(bert_forward, n_head=n_head))
    out = jax.block_until_ready(fwd(params, ids))

    assert out.shape == (B, S, vocab_size)
    assert out.dtype == jnp.float32
    # log-softmax rows should (numerically) sum to 1 after exp
    assert bool(jnp.allclose(jnp.exp(out).sum(-1), 1.0, atol=1e-3))
    print("KERNEL_OK")
</pallas_src>

<mosaic_0001>
module attributes {stable_mosaic.version = 11 : i64} {
  func.func @_ln_kernel(%arg0: i32, %arg1: memref<16x32xbf16, #tpu.memory_space<vmem>>, %arg2: memref<1x32xf32, #tpu.memory_space<vmem>>, %arg3: memref<1x32xf32, #tpu.memory_space<vmem>>, %arg4: memref<16x32xbf16, #tpu.memory_space<vmem>>) attributes {dimension_semantics = [#tpu.dimension_semantics<parallel>], iteration_bounds = array<i64: 1>, scalar_prefetch = 0 : i64, scratch_operands = 0 : i64, tpu.core_type = #tpu.core_type<tc>, window_params = [{transform_indices = @transform_0, window_bounds = array<i64: 16, 32>}, {pipeline_mode = #tpu.pipeline_mode<synchronous>, transform_indices = @transform_1, window_bounds = array<i64: 1, 32>}, {pipeline_mode = #tpu.pipeline_mode<synchronous>, transform_indices = @transform_2, window_bounds = array<i64: 1, 32>}, {transform_indices = @transform_3, window_bounds = array<i64: 16, 32>}]} {
    %c0 = arith.constant 0 : index
    %c0_0 = arith.constant 0 : index
    %0 = vector.load %arg1[%c0, %c0_0] : memref<16x32xbf16, #tpu.memory_space<vmem>>, vector<16x32xbf16>
    %1 = arith.extf %0 : vector<16x32xbf16> to vector<16x32xf32>
    %cst = arith.constant dense<0.000000e+00> : vector<16xf32>
    %2 = vector.multi_reduction <add>, %1, %cst [1] : vector<16x32xf32> to vector<16xf32>
    %3 = vector.shape_cast %2 : vector<16xf32> to vector<16x1xf32>
    %cst_1 = arith.constant 3.200000e+01 : f32
    %4 = vector.broadcast %cst_1 : f32 to vector<16x1xf32>
    %5 = arith.divf %3, %4 : vector<16x1xf32>
    %6 = vector.broadcast %5 : vector<16x1xf32> to vector<16x32xf32>
    %7 = arith.subf %1, %6 : vector<16x32xf32>
    %8 = vector.broadcast %5 : vector<16x1xf32> to vector<16x32xf32>
    %9 = arith.subf %1, %8 : vector<16x32xf32>
    %10 = arith.mulf %7, %9 : vector<16x32xf32>
    %cst_2 = arith.constant dense<0.000000e+00> : vector<16xf32>
    %11 = vector.multi_reduction <add>, %10, %cst_2 [1] : vector<16x32xf32> to vector<16xf32>
    %12 = vector.shape_cast %11 : vector<16xf32> to vector<16x1xf32>
    %cst_3 = arith.constant 3.200000e+01 : f32
    %13 = vector.broadcast %cst_3 : f32 to vector<16x1xf32>
    %14 = arith.divf %12, %13 : vector<16x1xf32>
    %15 = vector.broadcast %5 : vector<16x1xf32> to vector<16x32xf32>
    %16 = arith.subf %1, %15 : vector<16x32xf32>
    %cst_4 = arith.constant 9.99999974E-6 : f32
    %17 = vector.broadcast %cst_4 : f32 to vector<16x1xf32>
    %18 = arith.addf %14, %17 : vector<16x1xf32>
    %19 = math.rsqrt %18 : vector<16x1xf32>
    %20 = vector.broadcast %19 : vector<16x1xf32> to vector<16x32xf32>
    %21 = arith.mulf %16, %20 : vector<16x32xf32>
    %c0_5 = arith.constant 0 : index
    %c0_6 = arith.constant 0 : index
    %22 = vector.load %arg2[%c0_5, %c0_6] : memref<1x32xf32, #tpu.memory_space<vmem>>, vector<1x32xf32>
    %23 = vector.broadcast %22 : vector<1x32xf32> to vector<16x32xf32>
    %24 = arith.mulf %21, %23 : vector<16x32xf32>
    %c0_7 = arith.constant 0 : index
    %c0_8 = arith.constant 0 : index
    %25 = vector.load %arg3[%c0_7, %c0_8] : memref<1x32xf32, #tpu.memory_space<vmem>>, vector<1x32xf32>
    %26 = vector.broadcast %25 : vector<1x32xf32> to vector<16x32xf32>
    %27 = arith.addf %24, %26 : vector<16x32xf32>
    %28 = arith.truncf %27 : vector<16x32xf32> to vector<16x32xbf16>
    %c0_9 = arith.constant 0 : index
    %c0_10 = arith.constant 0 : index
    %29 = vector.load %arg4[%c0_9, %c0_10] : memref<16x32xbf16, #tpu.memory_space<vmem>>, vector<16x32xbf16>
    tpu.vector_store %arg4[%c0_9, %c0_10], %28 {strides = array<i32>} : memref<16x32xbf16, #tpu.memory_space<vmem>>, vector<16x32xbf16>,
    return
  }
  func.func @transform_0(%arg0: i32) -> (i32, i32) {
    %c0_i32 = arith.constant 0 : i32
    %c0_i32_0 = arith.constant 0 : i32
    return %arg0, %c0_i32 : i32, i32
  }
  func.func @transform_1(%arg0: i32) -> (i32, i32) {
    %c0_i32 = arith.constant 0 : i32
    %c0_i32_0 = arith.constant 0 : i32
    %c0_i32_1 = arith.constant 0 : i32
    return %c0_i32, %c0_i32_0 : i32, i32
  }
  func.func @transform_2(%arg0: i32) -> (i32, i32) {
    %c0_i32 = arith.constant 0 : i32
    %c0_i32_0 = arith.constant 0 : i32
    %c0_i32_1 = arith.constant 0 : i32
    return %c0_i32, %c0_i32_0 : i32, i32
  }
  func.func @transform_3(%arg0: i32) -> (i32, i32) {
    %c0_i32 = arith.constant 0 : i32
    %c0_i32_0 = arith.constant 0 : i32
    return %arg0, %c0_i32 : i32, i32
  }
}

module attributes {stable_mosaic.version = 11 : i64} {
  func.func @_linear_kernel(%arg0: i32, %arg1: i32, %arg2: memref<16x32xbf16, #tpu.memory_space<vmem>>, %arg3: memref<32x96xbf16, #tpu.memory_space<vmem>>, %arg4: memref<1x96xf32, #tpu.memory_space<vmem>>, %arg5: memref<16x96xbf16, #tpu.memory_space<vmem>>) attributes {dimension_semantics = [#tpu.dimension_semantics<parallel>, #tpu.dimension_semantics<parallel>], iteration_bounds = array<i64: 1, 1>, scalar_prefetch = 0 : i64, scratch_operands = 0 : i64, tpu.core_type = #tpu.core_type<tc>, window_params = [{transform_indices = @transform_0, window_bounds = array<i64: 16, 32>}, {transform_indices = @transform_1, window_bounds = array<i64: 32, 96>}, {transform_indices = @transform_2, window_bounds = array<i64: 1, 96>}, {transform_indices = @transform_3, window_bounds = array<i64: 16, 96>}]} {
    %c0 = arith.constant 0 : index
    %c0_0 = arith.constant 0 : index
    %0 = vector.load %arg2[%c0, %c0_0] : memref<16x32xbf16, #tpu.memory_space<vmem>>, vector<16x32xbf16>
    %c0_1 = arith.constant 0 : index
    %c0_2 = arith.constant 0 : index
    %1 = vector.load %arg3[%c0_1, %c0_2] : memref<32x96xbf16, #tpu.memory_space<vmem>>, vector<32x96xbf16>
    %cst = arith.constant dense<0.000000e+00> : vector<16x96xf32>
    %2 = tpu.matmul %0, %1, %cst {dimension_numbers = #tpu.dot_dimension_numbers<[1], [0], [0], [1], [0, 0, 1, 1], [], []>} : vector<16x32xbf16>, vector<32x96xbf16>, vector<16x96xf32> -> vector<16x96xf32>
    %c0_3 = arith.constant 0 : index
    %c0_4 = arith.constant 0 : index
    %3 = vector.load %arg4[%c0_3, %c0_4] : memref<1x96xf32, #tpu.memory_space<vmem>>, vector<1x96xf32>
    %4 = vector.broadcast %3 : vector<1x96xf32> to vector<16x96xf32>
    %5 = arith.addf %2, %4 : vector<16x96xf32>
    %6 = arith.truncf %5 : vector<16x96xf32> to vector<16x96xbf16>
    %c0_5 = arith.constant 0 : index
    %c0_6 = arith.constant 0 : index
    %7 = vector.load %arg5[%c0_5, %c0_6] : memref<16x96xbf16, #tpu.memory_space<vmem>>, vector<16x96xbf16>
    tpu.vector_store %arg5[%c0_5, %c0_6], %6 {strides = array<i32>} : memref<16x96xbf16, #tpu.memory_space<vmem>>, vector<16x96xbf16>,
    return
  }
  func.func @transform_0(%arg0: i32, %arg1: i32) -> (i32, i32) {
    %c0_i32 = arith.constant 0 : i32
    %c0_i32_0 = arith.constant 0 : i32
    return %arg0, %c0_i32 : i32, i32
  }
  func.func @transform_1(%arg0: i32, %arg1: i32) -> (i32, i32) {
    %c0_i32 = arith.constant 0 : i32
    %c0_i32_0 = arith.constant 0 : i32
    return %c0_i32, %arg1 : i32, i32
  }
  func.func @transform_2(%arg0: i32, %arg1: i32) -> (i32, i32) {
    %c0_i32 = arith.constant 0 : i32
    %c0_i32_0 = arith.constant 0 : i32
    return %c0_i32, %arg1 : i32, i32
  }
  func.func @transform_3(%arg0: i32, %arg1: i32) -> (i32, i32) {
    %c0_i32 = arith.constant 0 : i32
    return %arg0, %arg1 : i32, i32
  }
}

module attributes {stable_mosaic.version = 11 : i64} {
  func.func @_attn_kernel(%arg0: i32, %arg1: i32, %arg2: memref<8x8x8xbf16, #tpu.memory_space<vmem>>, %arg3: memref<8x8x8xbf16, #tpu.memory_space<vmem>>, %arg4: memref<8x8x8xbf16, #tpu.memory_space<vmem>>, %arg5: memref<8x8x8xbf16, #tpu.memory_space<vmem>>) attributes {dimension_semantics = [#tpu.dimension_semantics<parallel>, #tpu.dimension_semantics<parallel>], iteration_bounds = array<i64: 1, 1>, scalar_prefetch = 0 : i64, scratch_operands = 0 : i64, tpu.core_type = #tpu.core_type<tc>, window_params = [{transform_indices = @transform_0, window_bounds = array<i64: 8, 8, 8>}, {transform_indices = @transform_1, window_bounds = array<i64: 8, 8, 8>}, {transform_indices = @transform_2, window_bounds = array<i64: 8, 8, 8>}, {transform_indices = @transform_3, window_bounds = array<i64: 8, 8, 8>}]} {
    %c0 = arith.constant 0 : index
    %c0_0 = arith.constant 0 : index
    %c0_1 = arith.constant 0 : index
    %0 = vector.load %arg2[%c0, %c0_0, %c0_1] : memref<8x8x8xbf16, #tpu.memory_space<vmem>>, vector<8x8x8xbf16>
    %cst = arith.constant 3.535160e-01 : bf16
    %1 = vector.broadcast %cst : bf16 to vector<8x8x8xbf16>
    %2 = arith.mulf %0, %1 : vector<8x8x8xbf16>
    %c0_2 = arith.constant 0 : index
    %c0_3 = arith.constant 0 : index
    %c0_4 = arith.constant 0 : index
    %3 = vector.load %arg3[%c0_2, %c0_3, %c0_4] : memref<8x8x8xbf16, #tpu.memory_space<vmem>>, vector<8x8x8xbf16>
    "tpu.trace_start"() <{level = 10 : i32, message = "bqd,bkd->bqk"}> : () -> ()
    %cst_5 = arith.constant dense<0.000000e+00> : vector<8x8x8xf32>
    %4 = tpu.matmul %2, %3, %cst_5 {dimension_numbers = #tpu.dot_dimension_numbers<[2], [2], [1], [1], [0, 0, 0, 1, 1, 1], [0], [0]>} : vector<8x8x8xbf16>, vector<8x8x8xbf16>, vector<8x8x8xf32> -> vector<8x8x8xf32>
    "tpu.trace_stop"() : () -> ()
    %cst_6 = arith.constant dense<0xFF800000> : vector<8x8xf32>
    %5 = vector.multi_reduction <maximumf>, %4, %cst_6 [2] : vector<8x8x8xf32> to vector<8x8xf32>
    %6 = vector.shape_cast %5 : vector<8x8xf32> to vector<8x8x1xf32>
    %7 = vector.broadcast %6 : vector<8x8x1xf32> to vector<8x8x8xf32>
    %8 = arith.subf %4, %7 : vector<8x8x8xf32>
    %9 = math.exp %8 : vector<8x8x8xf32>
    %cst_7 = arith.constant dense<0.000000e+00> : vector<8x8xf32>
    %10 = vector.multi_reduction <add>, %9, %cst_7 [2] : vector<8x8x8xf32> to vector<8x8xf32>
    %11 = vector.shape_cast %10 : vector<8x8xf32> to vector<8x8x1xf32>
    %12 = arith.truncf %9 : vector<8x8x8xf32> to vector<8x8x8xbf16>
    %c0_8 = arith.constant 0 : index
    %c0_9 = arith.constant 0 : index
    %c0_10 = arith.constant 0 : index
    %13 = vector.load %arg4[%c0_8, %c0_9, %c0_10] : memref<8x8x8xbf16, #tpu.memory_space<vmem>>, vector<8x8x8xbf16>
    "tpu.trace_start"() <{level = 10 : i32, message = "bqk,bkd->bqd"}> : () -> ()
    %cst_11 = arith.constant dense<0.000000e+00> : vector<8x8x8xf32>
    %14 = tpu.matmul %12, %13, %cst_11 {dimension_numbers = #tpu.dot_dimension_numbers<[2], [1], [1], [2], [0, 0, 0, 1, 1, 2], [0], [0]>} : vector<8x8x8xbf16>, vector<8x8x8xbf16>, vector<8x8x8xf32> -> vector<8x8x8xf32>
    "tpu.trace_stop"() : () -> ()
    %15 = vector.broadcast %11 : vector<8x8x1xf32> to vector<8x8x8xf32>
    %16 = arith.divf %14, %15 : vector<8x8x8xf32>
    %17 = arith.truncf %16 : vector<8x8x8xf32> to vector<8x8x8xbf16>
    %c0_12 = arith.constant 0 : index
    %c0_13 = arith.constant 0 : index
    %c0_14 = arith.constant 0 : index
    %18 = vector.load %arg5[%c0_12, %c0_13, %c0_14] : memref<8x8x8xbf16, #tpu.memory_space<vmem>>, vector<8x8x8xbf16>
    tpu.vector_store %arg5[%c0_12, %c0_13, %c0_14], %17 {strides = array<i32>} : memref<8x8x8xbf16, #tpu.memory_space<vmem>>, vector<8x8x8xbf16>,
    return
  }
  func.func @transform_0(%arg0: i32, %arg1: i32) -> (i32, i32, i32) {
    %c0_i32 = arith.constant 0 : i32
    %c0_i32_0 = arith.constant 0 : i32
    return %arg0, %arg1, %c0_i32 : i32, i32, i32
  }
  func.func @transform_1(%arg0: i32, %arg1: i32) -> (i32, i32, i32) {
    %c0_i32 = arith.constant 0 : i32
    %c0_i32_0 = arith.constant 0 : i32
    %c0_i32_1 = arith.constant 0 : i32
    return %arg0, %c0_i32, %c0_i32_0 : i32, i32, i32
  }
  func.func @transform_2(%arg0: i32, %arg1: i32) -> (i32, i32, i32) {
    %c0_i32 = arith.constant 0 : i32
    %c0_i32_0 = arith.constant 0 : i32
    %c0_i32_1 = arith.constant 0 : i32
    return %arg0, %c0_i32, %c0_i32_0 : i32, i32, i32
  }
  func.func @transform_3(%arg0: i32, %arg1: i32) -> (i32, i32, i32) {
    %c0_i32 = arith.constant 0 : i32
    %c0_i32_0 = arith.constant 0 : i32
    return %arg0, %arg1, %c0_i32 : i32, i32, i32
  }
}

module attributes {stable_mosaic.version = 11 : i64} {
  func.func @_linear_res_ln_kernel(%arg0: i32, %arg1: memref<16x32xbf16, #tpu.memory_space<vmem>>, %arg2: memref<32x32xbf16, #tpu.memory_space<vmem>>, %arg3: memref<1x32xf32, #tpu.memory_space<vmem>>, %arg4: memref<16x32xbf16, #tpu.memory_space<vmem>>, %arg5: memref<1x32xf32, #tpu.memory_space<vmem>>, %arg6: memref<1x32xf32, #tpu.memory_space<vmem>>, %arg7: memref<16x32xbf16, #tpu.memory_space<vmem>>) attributes {dimension_semantics = [#tpu.dimension_semantics<parallel>], iteration_bounds = array<i64: 1>, scalar_prefetch = 0 : i64, scratch_operands = 0 : i64, tpu.core_type = #tpu.core_type<tc>, window_params = [{transform_indices = @transform_0, window_bounds = array<i64: 16, 32>}, {pipeline_mode = #tpu.pipeline_mode<synchronous>, transform_indices = @transform_1, window_bounds = array<i64: 32, 32>}, {pipeline_mode = #tpu.pipeline_mode<synchronous>, transform_indices = @transform_2, window_bounds = array<i64: 1, 32>}, {transform_indices = @transform_3, window_bounds = array<i64: 16, 32>}, {pipeline_mode = #tpu.pipeline_mode<synchronous>, transform_indices = @transform_4, window_bounds = array<i64: 1, 32>}, {pipeline_mode = #tpu.pipeline_mode<synchronous>, transform_indices = @transform_5, window_bounds = array<i64: 1, 32>}, {transform_indices = @transform_6, window_bounds = array<i64: 16, 32>}]} {
    %c0 = arith.constant 0 : index
    %c0_0 = arith.constant 0 : index
    %0 = vector.load %arg1[%c0, %c0_0] : memref<16x32xbf16, #tpu.memory_space<vmem>>, vector<16x32xbf16>
    %c0_1 = arith.constant 0 : index
    %c0_2 = arith.constant 0 : index
    %1 = vector.load %arg2[%c0_1, %c0_2] : memref<32x32xbf16, #tpu.memory_space<vmem>>, vector<32x32xbf16>
    %cst = arith.constant dense<0.000000e+00> : vector<16x32xf32>
    %2 = tpu.matmul %0, %1, %cst {dimension_numbers = #tpu.dot_dimension_numbers<[1], [0], [0], [1], [0, 0, 1, 1], [], []>} : vector<16x32xbf16>, vector<32x32xbf16>, vector<16x32xf32> -> vector<16x32xf32>
    %c0_3 = arith.constant 0 : index
    %c0_4 = arith.constant 0 : index
    %3 = vector.load %arg3[%c0_3, %c0_4] : memref<1x32xf32, #tpu.memory_space<vmem>>, vector<1x32xf32>
    %4 = vector.broadcast %3 : vector<1x32xf32> to vector<16x32xf32>
    %5 = arith.addf %2, %4 : vector<16x32xf32>
    %c0_5 = arith.constant 0 : index
    %c0_6 = arith.constant 0 : index
    %6 = vector.load %arg4[%c0_5, %c0_6] : memref<16x32xbf16, #tpu.memory_space<vmem>>, vector<16x32xbf16>
    %7 = arith.extf %6 : vector<16x32xbf16> to vector<16x32xf32>
    %8 = arith.addf %5, %7 : vector<16x32xf32>
    %cst_7 = arith.constant dense<0.000000e+00> : vector<16xf32>
    %9 = vector.multi_reduction <add>, %8, %cst_7 [1] : vector<16x32xf32> to vector<16xf32>
    %10 = vector.shape_cast %9 : vector<16xf32> to vector<16x1xf32>
    %cst_8 = arith.constant 3.200000e+01 : f32
    %11 = vector.broadcast %cst_8 : f32 to vector<16x1xf32>
    %12 = arith.divf %10, %11 : vector<16x1xf32>
    %13 = vector.broadcast %12 : vector<16x1xf32> to vector<16x32xf32>
    %14 = arith.subf %8, %13 : vector<16x32xf32>
    %15 = vector.broadcast %12 : vector<16x1xf32> to vector<16x32xf32>
    %16 = arith.subf %8, %15 : vector<16x32xf32>
    %17 = arith.mulf %14, %16 : vector<16x32xf32>
    %cst_9 = arith.constant dense<0.000000e+00> : vector<16xf32>
    %18 = vector.multi_reduction <add>, %17, %cst_9 [1] : vector<16x32xf32> to vector<16xf32>
    %19 = vector.shape_cast %18 : vector<16xf32> to vector<16x1xf32>
    %cst_10 = arith.constant 3.200000e+01 : f32
    %20 = vector.broadcast %cst_10 : f32 to vector<16x1xf32>
    %21 = arith.divf %19, %20 : vector<16x1xf32>
    %22 = vector.broadcast %12 : vector<16x1xf32> to vector<16x32xf32>
    %23 = arith.subf %8, %22 : vector<16x32xf32>
    %cst_11 = arith.constant 9.99999974E-6 : f32
    %24 = vector.broadcast %cst_11 : f32 to vector<16x1xf32>
    %25 = arith.addf %21, %24 : vector<16x1xf32>
    %26 = math.rsqrt %25 : vector<16x1xf32>
    %27 = vector.broadcast %26 : vector<16x1xf32> to vector<16x32xf32>
    %28 = arith.mulf %23, %27 : vector<16x32xf32>
    %c0_12 = arith.constant 0 : index
    %c0_13 = arith.constant 0 : index
    %29 = vector.load %arg5[%c0_12, %c0_13] : memref<1x32xf32, #tpu.memory_space<vmem>>, vector<1x32xf32>
    %30 = vector.broadcast %29 : vector<1x32xf32> to vector<16x32xf32>
    %31 = arith.mulf %28, %30 : vector<16x32xf32>
    %c0_14 = arith.constant 0 : index
    %c0_15 = arith.constant 0 : index
    %32 = vector.load %arg6[%c0_14, %c0_15] : memref<1x32xf32, #tpu.memory_space<vmem>>, vector<1x32xf32>
    %33 = vector.broadcast %32 : vector<1x32xf32> to vector<16x32xf32>
    %34 = arith.addf %31, %33 : vector<16x32xf32>
    %35 = arith.truncf %34 : vector<16x32xf32> to vector<16x32xbf16>
    %c0_16 = arith.constant 0 : index
    %c0_17 = arith.constant 0 : index
    %36 = vector.load %arg7[%c0_16, %c0_17] : memref<16x32xbf16, #tpu.memory_space<vmem>>, vector<16x32xbf16>
    tpu.vector_store %arg7[%c0_16, %c0_17], %35 {strides = array<i32>} : memref<16x32xbf16, #tpu.memory_space<vmem>>, vector<16x32xbf16>,
    return
  }
  func.func @transform_0(%arg0: i32) -> (i32, i32) {
    %c0_i32 = arith.constant 0 : i32
    %c0_i32_0 = arith.constant 0 : i32
    return %arg0, %c0_i32 : i32, i32
  }
  func.func @transform_1(%arg0: i32) -> (i32, i32) {
    %c0_i32 = arith.constant 0 : i32
    %c0_i32_0 = arith.constant 0 : i32
    %c0_i32_1 = arith.constant 0 : i32
    return %c0_i32, %c0_i32_0 : i32, i32
  }
  func.func @transform_2(%arg0: i32) -> (i32, i32) {
    %c0_i32 = arith.constant 0 : i32
    %c0_i32_0 = arith.constant 0 : i32
    %c0_i32_1 = arith.constant 0 : i32
    return %c0_i32, %c0_i32_0 : i32, i32
  }
  func.func @transform_3(%arg0: i32) -> (i32, i32) {
    %c0_i32 = arith.constant 0 : i32
    %c0_i32_0 = arith.constant 0 : i32
    return %arg0, %c0_i32 : i32, i32
  }
  func.func @transform_4(%arg0: i32) -> (i32, i32) {
    %c0_i32 = arith.constant 0 : i32
    %c0_i32_0 = arith.constant 0 : i32
    %c0_i32_1 = arith.constant 0 : i32
    return %c0_i32, %c0_i32_0 : i32, i32
  }
  func.func @transform_5(%arg0: i32) -> (i32, i32) {
    %c0_i32 = arith.constant 0 : i32
    %c0_i32_0 = arith.constant 0 : i32
    %c0_i32_1 = arith.constant 0 : i32
    return %c0_i32, %c0_i32_0 : i32, i32
  }
  func.func @transform_6(%arg0: i32) -> (i32, i32) {
    %c0_i32 = arith.constant 0 : i32
    %c0_i32_0 = arith.constant 0 : i32
    return %arg0, %c0_i32 : i32, i32
  }
}

module attributes {stable_mosaic.version = 11 : i64} {
  func.func @_linear_res_ln_kernel(%arg0: i32, %arg1: memref<16x128xbf16, #tpu.memory_space<vmem>>, %arg2: memref<128x32xbf16, #tpu.memory_space<vmem>>, %arg3: memref<1x32xf32, #tpu.memory_space<vmem>>, %arg4: memref<16x32xbf16, #tpu.memory_space<vmem>>, %arg5: memref<1x32xf32, #tpu.memory_space<vmem>>, %arg6: memref<1x32xf32, #tpu.memory_space<vmem>>, %arg7: memref<16x32xbf16, #tpu.memory_space<vmem>>) attributes {dimension_semantics = [#tpu.dimension_semantics<parallel>], iteration_bounds = array<i64: 1>, scalar_prefetch = 0 : i64, scratch_operands = 0 : i64, tpu.core_type = #tpu.core_type<tc>, window_params = [{transform_indices = @transform_0, window_bounds = array<i64: 16, 128>}, {pipeline_mode = #tpu.pipeline_mode<synchronous>, transform_indices = @transform_1, window_bounds = array<i64: 128, 32>}, {pipeline_mode = #tpu.pipeline_mode<synchronous>, transform_indices = @transform_2, window_bounds = array<i64: 1, 32>}, {transform_indices = @transform_3, window_bounds = array<i64: 16, 32>}, {pipeline_mode = #tpu.pipeline_mode<synchronous>, transform_indices = @transform_4, window_bounds = array<i64: 1, 32>}, {pipeline_mode = #tpu.pipeline_mode<synchronous>, transform_indices = @transform_5, window_bounds = array<i64: 1, 32>}, {transform_indices = @transform_6, window_bounds = array<i64: 16, 32>}]} {
    %c0 = arith.constant 0 : index
    %c0_0 = arith.constant 0 : index
    %0 = vector.load %arg1[%c0, %c0_0] : memref<16x128xbf16, #tpu.memory_space<vmem>>, vector<16x128xbf16>
    %c0_1 = arith.constant 0 : index
    %c0_2 = arith.constant 0 : index
    %1 = vector.load %arg2[%c0_1, %c0_2] : memref<128x32xbf16, #tpu.memory_space<vmem>>, vector<128x32xbf16>
    %cst = arith.constant dense<0.000000e+00> : vector<16x32xf32>
    %2 = tpu.matmul %0, %1, %cst {dimension_numbers = #tpu.dot_dimension_numbers<[1], [0], [0], [1], [0, 0, 1, 1], [], []>} : vector<16x128xbf16>, vector<128x32xbf16>, vector<16x32xf32> -> vector<16x32xf32>
    %c0_3 = arith.constant 0 : index
    %c0_4 = arith.constant 0 : index
    %3 = vector.load %arg3[%c0_3, %c0_4] : memref<1x32xf32, #tpu.memory_space<vmem>>, vector<1x32xf32>
    %4 = vector.broadcast %3 : vector<1x32xf32> to vector<16x32xf32>
    %5 = arith.addf %2, %4 : vector<16x32xf32>
    %c0_5 = arith.constant 0 : index
    %c0_6 = arith.constant 0 : index
    %6 = vector.load %arg4[%c0_5, %c0_6] : memref<16x32xbf16, #tpu.memory_space<vmem>>, vector<16x32xbf16>
    %7 = arith.extf %6 : vector<16x32xbf16> to vector<16x32xf32>
    %8 = arith.addf %5, %7 : vector<16x32xf32>
    %cst_7 = arith.constant dense<0.000000e+00> : vector<16xf32>
    %9 = vector.multi_reduction <add>, %8, %cst_7 [1] : vector<16x32xf32> to vector<16xf32>
    %10 = vector.shape_cast %9 : vector<16xf32> to vector<16x1xf32>
    %cst_8 = arith.constant 3.200000e+01 : f32
    %11 = vector.broadcast %cst_8 : f32 to vector<16x1xf32>
    %12 = arith.divf %10, %11 : vector<16x1xf32>
    %13 = vector.broadcast %12 : vector<16x1xf32> to vector<16x32xf32>
    %14 = arith.subf %8, %13 : vector<16x32xf32>
    %15 = vector.broadcast %12 : vector<16x1xf32> to vector<16x32xf32>
    %16 = arith.subf %8, %15 : vector<16x32xf32>
    %17 = arith.mulf %14, %16 : vector<16x32xf32>
    %cst_9 = arith.constant dense<0.000000e+00> : vector<16xf32>
    %18 = vector.multi_reduction <add>, %17, %cst_9 [1] : vector<16x32xf32> to vector<16xf32>
    %19 = vector.shape_cast %18 : vector<16xf32> to vector<16x1xf32>
    %cst_10 = arith.constant 3.200000e+01 : f32
    %20 = vector.broadcast %cst_10 : f32 to vector<16x1xf32>
    %21 = arith.divf %19, %20 : vector<16x1xf32>
    %22 = vector.broadcast %12 : vector<16x1xf32> to vector<16x32xf32>
    %23 = arith.subf %8, %22 : vector<16x32xf32>
    %cst_11 = arith.constant 9.99999974E-6 : f32
    %24 = vector.broadcast %cst_11 : f32 to vector<16x1xf32>
    %25 = arith.addf %21, %24 : vector<16x1xf32>
    %26 = math.rsqrt %25 : vector<16x1xf32>
    %27 = vector.broadcast %26 : vector<16x1xf32> to vector<16x32xf32>
    %28 = arith.mulf %23, %27 : vector<16x32xf32>
    %c0_12 = arith.constant 0 : index
    %c0_13 = arith.constant 0 : index
    %29 = vector.load %arg5[%c0_12, %c0_13] : memref<1x32xf32, #tpu.memory_space<vmem>>, vector<1x32xf32>
    %30 = vector.broadcast %29 : vector<1x32xf32> to vector<16x32xf32>
    %31 = arith.mulf %28, %30 : vector<16x32xf32>
    %c0_14 = arith.constant 0 : index
    %c0_15 = arith.constant 0 : index
    %32 = vector.load %arg6[%c0_14, %c0_15] : memref<1x32xf32, #tpu.memory_space<vmem>>, vector<1x32xf32>
    %33 = vector.broadcast %32 : vector<1x32xf32> to vector<16x32xf32>
    %34 = arith.addf %31, %33 : vector<16x32xf32>
    %35 = arith.truncf %34 : vector<16x32xf32> to vector<16x32xbf16>
    %c0_16 = arith.constant 0 : index
    %c0_17 = arith.constant 0 : index
    %36 = vector.load %arg7[%c0_16, %c0_17] : memref<16x32xbf16, #tpu.memory_space<vmem>>, vector<16x32xbf16>
    tpu.vector_store %arg7[%c0_16, %c0_17], %35 {strides = array<i32>} : memref<16x32xbf16, #tpu.memory_space<vmem>>, vector<16x32xbf16>,
    return
  }
  func.func @transform_0(%arg0: i32) -> (i32, i32) {
    %c0_i32 = arith.constant 0 : i32
    %c0_i32_0 = arith.constant 0 : i32
    return %arg0, %c0_i32 : i32, i32
  }
  func.func @transform_1(%arg0: i32) -> (i32, i32) {
    %c0_i32 = arith.constant 0 : i32
    %c0_i32_0 = arith.constant 0 : i32
    %c0_i32_1 = arith.constant 0 : i32
    return %c0_i32, %c0_i32_0 : i32, i32
  }
  func.func @transform_2(%arg0: i32) -> (i32, i32) {
    %c0_i32 = arith.constant 0 : i32
    %c0_i32_0 = arith.constant 0 : i32
    %c0_i32_1 = arith.constant 0 : i32
    return %c0_i32, %c0_i32_0 : i32, i32
  }
  func.func @transform_3(%arg0: i32) -> (i32, i32) {
    %c0_i32 = arith.constant 0 : i32
    %c0_i32_0 = arith.constant 0 : i32
    return %arg0, %c0_i32 : i32, i32
  }
  func.func @transform_4(%arg0: i32) -> (i32, i32) {
    %c0_i32 = arith.constant 0 : i32
    %c0_i32_0 = arith.constant 0 : i32
    %c0_i32_1 = arith.constant 0 : i32
    return %c0_i32, %c0_i32_0 : i32, i32
  }
  func.func @transform_5(%arg0: i32) -> (i32, i32) {
    %c0_i32 = arith.constant 0 : i32
    %c0_i32_0 = arith.constant 0 : i32
    %c0_i32_1 = arith.constant 0 : i32
    return %c0_i32, %c0_i32_0 : i32, i32
  }
  func.func @transform_6(%arg0: i32) -> (i32, i32) {
    %c0_i32 = arith.constant 0 : i32
    %c0_i32_0 = arith.constant 0 : i32
    return %arg0, %c0_i32 : i32, i32
  }
}

module attributes {stable_mosaic.version = 11 : i64} {
  func.func @_linear_kernel(%arg0: i32, %arg1: i32, %arg2: memref<16x32xbf16, #tpu.memory_space<vmem>>, %arg3: memref<32x128xbf16, #tpu.memory_space<vmem>>, %arg4: memref<1x128xf32, #tpu.memory_space<vmem>>, %arg5: memref<16x128xbf16, #tpu.memory_space<vmem>>) attributes {dimension_semantics = [#tpu.dimension_semantics<parallel>, #tpu.dimension_semantics<parallel>], iteration_bounds = array<i64: 1, 1>, scalar_prefetch = 0 : i64, scratch_operands = 0 : i64, tpu.core_type = #tpu.core_type<tc>, window_params = [{transform_indices = @transform_0, window_bounds = array<i64: 16, 32>}, {transform_indices = @transform_1, window_bounds = array<i64: 32, 128>}, {transform_indices = @transform_2, window_bounds = array<i64: 1, 128>}, {transform_indices = @transform_3, window_bounds = array<i64: 16, 128>}]} {
    %c0 = arith.constant 0 : index
    %c0_0 = arith.constant 0 : index
    %0 = vector.load %arg2[%c0, %c0_0] : memref<16x32xbf16, #tpu.memory_space<vmem>>, vector<16x32xbf16>
    %c0_1 = arith.constant 0 : index
    %c0_2 = arith.constant 0 : index
    %1 = vector.load %arg3[%c0_1, %c0_2] : memref<32x128xbf16, #tpu.memory_space<vmem>>, vector<32x128xbf16>
    %cst = arith.constant dense<0.000000e+00> : vector<16x128xf32>
    %2 = tpu.matmul %0, %1, %cst {dimension_numbers = #tpu.dot_dimension_numbers<[1], [0], [0], [1], [0, 0, 1, 1], [], []>} : vector<16x32xbf16>, vector<32x128xbf16>, vector<16x128xf32> -> vector<16x128xf32>
    %c0_3 = arith.constant 0 : index
    %c0_4 = arith.constant 0 : index
    %3 = vector.load %arg4[%c0_3, %c0_4] : memref<1x128xf32, #tpu.memory_space<vmem>>, vector<1x128xf32>
    %4 = vector.broadcast %3 : vector<1x128xf32> to vector<16x128xf32>
    %5 = arith.addf %2, %4 : vector<16x128xf32>
    %6 = arith.mulf %5, %5 : vector<16x128xf32>
    %7 = arith.mulf %5, %6 : vector<16x128xf32>
    %cst_5 = arith.constant 4.471500e-02 : f32
    %8 = vector.broadcast %cst_5 : f32 to vector<16x128xf32>
    %9 = arith.mulf %8, %7 : vector<16x128xf32>
    %10 = arith.addf %5, %9 : vector<16x128xf32>
    %cst_6 = arith.constant 0.797884583 : f32
    %11 = vector.broadcast %cst_6 : f32 to vector<16x128xf32>
    %12 = arith.mulf %11, %10 : vector<16x128xf32>
    %13 = math.tanh %12 : vector<16x128xf32>
    %cst_7 = arith.constant 1.000000e+00 : f32
    %14 = vector.broadcast %cst_7 : f32 to vector<16x128xf32>
    %15 = arith.addf %14, %13 : vector<16x128xf32>
    %cst_8 = arith.constant 5.000000e-01 : f32
    %16 = vector.broadcast %cst_8 : f32 to vector<16x128xf32>
    %17 = arith.mulf %16, %15 : vector<16x128xf32>
    %18 = arith.mulf %5, %17 : vector<16x128xf32>
    %19 = arith.truncf %18 : vector<16x128xf32> to vector<16x128xbf16>
    %c0_9 = arith.constant 0 : index
    %c0_10 = arith.constant 0 : index
    %20 = vector.load %arg5[%c0_9, %c0_10] : memref<16x128xbf16, #tpu.memory_space<vmem>>, vector<16x128xbf16>
    tpu.vector_store %arg5[%c0_9, %c0_10], %19 {strides = array<i32>} : memref<16x128xbf16, #tpu.memory_space<vmem>>, vector<16x128xbf16>,
    return
  }
  func.func @transform_0(%arg0: i32, %arg1: i32) -> (i32, i32) {
    %c0_i32 = arith.constant 0 : i32
    %c0_i32_0 = arith.constant 0 : i32
    return %arg0, %c0_i32 : i32, i32
  }
  func.func @transform_1(%arg0: i32, %arg1: i32) -> (i32, i32) {
    %c0_i32 = arith.constant 0 : i32
    %c0_i32_0 = arith.constant 0 : i32
    return %c0_i32, %arg1 : i32, i32
  }
  func.func @transform_2(%arg0: i32, %arg1: i32) -> (i32, i32) {
    %c0_i32 = arith.constant 0 : i32
    %c0_i32_0 = arith.constant 0 : i32
    return %c0_i32, %arg1 : i32, i32
  }
  func.func @transform_3(%arg0: i32, %arg1: i32) -> (i32, i32) {
    %c0_i32 = arith.constant 0 : i32
    return %arg0, %arg1 : i32, i32
  }
}

module attributes {stable_mosaic.version = 11 : i64} {
  func.func @_lse_logits_kernel(%arg0: i32, %arg1: i32, %arg2: memref<16x32xbf16, #tpu.memory_space<vmem>>, %arg3: memref<32x512xbf16, #tpu.memory_space<vmem>>, %arg4: memref<1x512xf32, #tpu.memory_space<vmem>>, %arg5: memref<16x512xbf16, #tpu.memory_space<vmem>>, %arg6: memref<16x1xf32, #tpu.memory_space<vmem>>, %arg7: memref<16x1xf32, #tpu.memory_space<vmem>>, %arg8: memref<16x1xf32, #tpu.memory_space<vmem>>) attributes {dimension_semantics = [#tpu.dimension_semantics<parallel>, #tpu.dimension_semantics<arbitrary>], iteration_bounds = array<i64: 1, 1>, scalar_prefetch = 0 : i64, scratch_operands = 2 : i64, tpu.core_type = #tpu.core_type<tc>, window_params = [{transform_indices = @transform_0, window_bounds = array<i64: 16, 32>}, {transform_indices = @transform_1, window_bounds = array<i64: 32, 512>}, {transform_indices = @transform_2, window_bounds = array<i64: 1, 512>}, {transform_indices = @transform_3, window_bounds = array<i64: 16, 512>}, {transform_indices = @transform_4, window_bounds = array<i64: 16, 1>}]} {
    %c0_i32 = arith.constant 0 : i32
    %0 = arith.cmpi eq, %arg1, %c0_i32 : i32
    %1 = arith.extui %0 : i1 to i32
    %c0_i32_0 = arith.constant 0 : i32
    %2 = arith.cmpi ne, %1, %c0_i32_0 : i32
    scf.if %2 {
      %cst_20 = arith.constant 0xFF800000 : f32
      %31 = vector.broadcast %cst_20 : f32 to vector<16x1xf32>
      %c0_21 = arith.constant 0 : index
      %c0_22 = arith.constant 0 : index
      %32 = vector.load %arg7[%c0_21, %c0_22] : memref<16x1xf32, #tpu.memory_space<vmem>>, vector<16x1xf32>
      tpu.vector_store %arg7[%c0_21, %c0_22], %31 {strides = array<i32>} : memref<16x1xf32, #tpu.memory_space<vmem>>, vector<16x1xf32>,
      %cst_23 = arith.constant 0.000000e+00 : f32
      %33 = vector.broadcast %cst_23 : f32 to vector<16x1xf32>
      %c0_24 = arith.constant 0 : index
      %c0_25 = arith.constant 0 : index
      %34 = vector.load %arg8[%c0_24, %c0_25] : memref<16x1xf32, #tpu.memory_space<vmem>>, vector<16x1xf32>
      tpu.vector_store %arg8[%c0_24, %c0_25], %33 {strides = array<i32>} : memref<16x1xf32, #tpu.memory_space<vmem>>, vector<16x1xf32>,
    } else {
    }
    %c0 = arith.constant 0 : index
    %c0_1 = arith.constant 0 : index
    %3 = vector.load %arg2[%c0, %c0_1] : memref<16x32xbf16, #tpu.memory_space<vmem>>, vector<16x32xbf16>
    %c0_2 = arith.constant 0 : index
    %c0_3 = arith.constant 0 : index
    %4 = vector.load %arg3[%c0_2, %c0_3] : memref<32x512xbf16, #tpu.memory_space<vmem>>, vector<32x512xbf16>
    %cst = arith.constant dense<0.000000e+00> : vector<16x512xf32>
    %5 = tpu.matmul %3, %4, %cst {dimension_numbers = #tpu.dot_dimension_numbers<[1], [0], [0], [1], [0, 0, 1, 1], [], []>} : vector<16x32xbf16>, vector<32x512xbf16>, vector<16x512xf32> -> vector<16x512xf32>
    %c0_4 = arith.constant 0 : index
    %c0_5 = arith.constant 0 : index
    %6 = vector.load %arg4[%c0_4, %c0_5] : memref<1x512xf32, #tpu.memory_space<vmem>>, vector<1x512xf32>
    %7 = vector.broadcast %6 : vector<1x512xf32> to vector<16x512xf32>
    %8 = arith.addf %5, %7 : vector<16x512xf32>
    %9 = arith.truncf %8 : vector<16x512xf32> to vector<16x512xbf16>
    %c0_6 = arith.constant 0 : index
    %c0_7 = arith.constant 0 : index
    %10 = vector.load %arg5[%c0_6, %c0_7] : memref<16x512xbf16, #tpu.memory_space<vmem>>, vector<16x512xbf16>
    tpu.vector_store %arg5[%c0_6, %c0_7], %9 {strides = array<i32>} : memref<16x512xbf16, #tpu.memory_space<vmem>>, vector<16x512xbf16>,
    %11 = arith.extf %9 : vector<16x512xbf16> to vector<16x512xf32>
    %c0_8 = arith.constant 0 : index
    %c0_9 = arith.constant 0 : index
    %12 = vector.load %arg7[%c0_8, %c0_9] : memref<16x1xf32, #tpu.memory_space<vmem>>, vector<16x1xf32>
    %cst_10 = arith.constant dense<0xFF800000> : vector<16xf32>
    %13 = vector.multi_reduction <maximumf>, %11, %cst_10 [1] : vector<16x512xf32> to vector<16xf32>
    %14 = vector.shape_cast %13 : vector<16xf32> to vector<16x1xf32>
    %15 = arith.maximumf %12, %14 : vector<16x1xf32>
    %16 = arith.subf %12, %15 : vector<16x1xf32>
    %17 = math.exp %16 : vector<16x1xf32>
    %c0_11 = arith.constant 0 : index
    %c0_12 = arith.constant 0 : index
    %18 = vector.load %arg8[%c0_11, %c0_12] : memref<16x1xf32, #tpu.memory_space<vmem>>, vector<16x1xf32>
    %19 = arith.mulf %17, %18 : vector<16x1xf32>
    %20 = vector.broadcast %15 : vector<16x1xf32> to vector<16x512xf32>
    %21 = arith.subf %11, %20 : vector<16x512xf32>
    %22 = math.exp %21 : vector<16x512xf32>
    %cst_13 = arith.constant dense<0.000000e+00> : vector<16xf32>
    %23 = vector.multi_reduction <add>, %22, %cst_13 [1] : vector<16x512xf32> to vector<16xf32>
    %24 = vector.shape_cast %23 : vector<16xf32> to vector<16x1xf32>
    %25 = arith.addf %19, %24 : vector<16x1xf32>
    %c0_14 = arith.constant 0 : index
    %c0_15 = arith.constant 0 : index
    %26 = vector.load %arg8[%c0_14, %c0_15] : memref<16x1xf32, #tpu.memory_space<vmem>>, vector<16x1xf32>
    tpu.vector_store %arg8[%c0_14, %c0_15], %25 {strides = array<i32>} : memref<16x1xf32, #tpu.memory_space<vmem>>, vector<16x1xf32>,
    %c0_16 = arith.constant 0 : index
    %c0_17 = arith.constant 0 : index
    %27 = vector.load %arg7[%c0_16, %c0_17] : memref<16x1xf32, #tpu.memory_space<vmem>>, vector<16x1xf32>
    tpu.vector_store %arg7[%c0_16, %c0_17], %15 {strides = array<i32>} : memref<16x1xf32, #tpu.memory_space<vmem>>, vector<16x1xf32>,
    %c0_i32_18 = arith.constant 0 : i32
    %28 = arith.cmpi eq, %arg1, %c0_i32_18 : i32
    %29 = arith.extui %28 : i1 to i32
    %c0_i32_19 = arith.constant 0 : i32
    %30 = arith.cmpi ne, %29, %c0_i32_19 : i32
    scf.if %30 {
      %c0_20 = arith.constant 0 : index
      %c0_21 = arith.constant 0 : index
      %31 = vector.load %arg7[%c0_20, %c0_21] : memref<16x1xf32, #tpu.memory_space<vmem>>, vector<16x1xf32>
      %c0_22 = arith.constant 0 : index
      %c0_23 = arith.constant 0 : index
      %32 = vector.load %arg8[%c0_22, %c0_23] : memref<16x1xf32, #tpu.memory_space<vmem>>, vector<16x1xf32>
      %33 = math.log %32 : vector<16x1xf32>
      %34 = arith.addf %31, %33 : vector<16x1xf32>
      %c0_24 = arith.constant 0 : index
      %c0_25 = arith.constant 0 : index
      %35 = vector.load %arg6[%c0_24, %c0_25] : memref<16x1xf32, #tpu.memory_space<vmem>>, vector<16x1xf32>
      tpu.vector_store %arg6[%c0_24, %c0_25], %34 {strides = array<i32>} : memref<16x1xf32, #tpu.memory_space<vmem>>, vector<16x1xf32>,
    } else {
    }
    return
  }
  func.func @transform_0(%arg0: i32, %arg1: i32) -> (i32, i32) {
    %c0_i32 = arith.constant 0 : i32
    %c0_i32_0 = arith.constant 0 : i32
    return %arg0, %c0_i32 : i32, i32
  }
  func.func @transform_1(%arg0: i32, %arg1: i32) -> (i32, i32) {
    %c0_i32 = arith.constant 0 : i32
    %c0_i32_0 = arith.constant 0 : i32
    return %c0_i32, %arg1 : i32, i32
  }
  func.func @transform_2(%arg0: i32, %arg1: i32) -> (i32, i32) {
    %c0_i32 = arith.constant 0 : i32
    %c0_i32_0 = arith.constant 0 : i32
    return %c0_i32, %arg1 : i32, i32
  }
  func.func @transform_3(%arg0: i32, %arg1: i32) -> (i32, i32) {
    %c0_i32 = arith.constant 0 : i32
    return %arg0, %arg1 : i32, i32
  }
  func.func @transform_4(%arg0: i32, %arg1: i32) -> (i32, i32) {
    %c0_i32 = arith.constant 0 : i32
    %c0_i32_0 = arith.constant 0 : i32
    return %arg0, %c0_i32 : i32, i32
  }
}

module attributes {stable_mosaic.version = 11 : i64} {
  func.func @_logp_kernel(%arg0: i32, %arg1: i32, %arg2: memref<16x512xbf16, #tpu.memory_space<vmem>>, %arg3: memref<16x1xf32, #tpu.memory_space<vmem>>, %arg4: memref<16x512xf32, #tpu.memory_space<vmem>>) attributes {dimension_semantics = [#tpu.dimension_semantics<parallel>, #tpu.dimension_semantics<parallel>], iteration_bounds = array<i64: 1, 1>, scalar_prefetch = 0 : i64, scratch_operands = 0 : i64, tpu.core_type = #tpu.core_type<tc>, window_params = [{transform_indices = @transform_0, window_bounds = array<i64: 16, 512>}, {transform_indices = @transform_1, window_bounds = array<i64: 16, 1>}, {transform_indices = @transform_2, window_bounds = array<i64: 16, 512>}]} {
    %c0 = arith.constant 0 : index
    %c0_0 = arith.constant 0 : index
    %0 = vector.load %arg2[%c0, %c0_0] : memref<16x512xbf16, #tpu.memory_space<vmem>>, vector<16x512xbf16>
    %1 = arith.extf %0 : vector<16x512xbf16> to vector<16x512xf32>
    %c0_1 = arith.constant 0 : index
    %c0_2 = arith.constant 0 : index
    %2 = vector.load %arg3[%c0_1, %c0_2] : memref<16x1xf32, #tpu.memory_space<vmem>>, vector<16x1xf32>
    %3 = vector.broadcast %2 : vector<16x1xf32> to vector<16x512xf32>
    %4 = arith.subf %1, %3 : vector<16x512xf32>
    %c0_3 = arith.constant 0 : index
    %c0_4 = arith.constant 0 : index
    %5 = vector.load %arg4[%c0_3, %c0_4] : memref<16x512xf32, #tpu.memory_space<vmem>>, vector<16x512xf32>
    tpu.vector_store %arg4[%c0_3, %c0_4], %4 {strides = array<i32>} : memref<16x512xf32, #tpu.memory_space<vmem>>, vector<16x512xf32>,
    return
  }
  func.func @transform_0(%arg0: i32, %arg1: i32) -> (i32, i32) {
    %c0_i32 = arith.constant 0 : i32
    return %arg0, %arg1 : i32, i32
  }
  func.func @transform_1(%arg0: i32, %arg1: i32) -> (i32, i32) {
    %c0_i32 = arith.constant 0 : i32
    %c0_i32_0 = arith.constant 0 : i32
    return %arg0, %c0_i32 : i32, i32
  }
  func.func @transform_2(%arg0: i32, %arg1: i32) -> (i32, i32) {
    %c0_i32 = arith.constant 0 : i32
    return %arg0, %arg1 : i32, i32
  }
}

</mosaic_0001>

<bundles_post_ra>
// kernel: bert_forward.14
= control target key start
LH: loop header
LB: loop body
LE: loop exit
PB: predicated region body
PF: predicated region fallthrough
CT: control target
= control target key end

     0   :  { %v130_v0 = vmov 0.0   ;;  %vm131_vm0 = vmmov 0   ;;  %vm45_vm1 = vcmask 261120   ;;  %vm98_vm2 = vcmask 781312   ;;  %s170_s1 = inlined_call_operand.vmem [shape: bf16[32,96], index: 1, kind: input, shape index: {}]   ;;  %s171_s0 = inlined_call_operand.vmem [shape: bf16[16,32], index: 0, kind: input, shape index: {}]   ;;  %s172_s2 = inlined_call_operand.vmem [shape: f32[1,96], index: 2, kind: input, shape index: {}]   ;;  %s173_s3 = inlined_call_operand.vmem [shape: bf16[16,96], index: 3, kind: output, shape index: {}]  }
   0x1   :  { %117 = vmatprep.subr.bf16.mxu0 %v130_v0  ;;  %v127_v1 = vld [vmem:[%s170_s1 + $0x8] sm:$0xff]   ;;  %121 = vmatprep.mubr.msk.bf16.mxu0 %vm131_vm0, %v130_v0  ;;  %v128_v2 = vld [vmem:[%s170_s1] sm:$0xff]  }
   0x2   :  { %118 = vmatpush3.bf16.msra.mxu0 %v127_v1  ;;  %v129_v3 = vld [vmem:[%s171_s0] sm:$0xff]  }
   0x3   :  { %119 = vmatprep.subr.bf16.mxu0 %v130_v0  ;;  %v105_v4 = vld [vmem:[%s172_s2] ss:$0 sm:$0xff] }
   0x6   :  { %120 = vmatpush3.bf16.msra.mxu0 %v128_v2 }
   0x9   :  { %122 = vmatmul.mubr.msk.bf16.vlgmr.msra.gmra.mxu0 %vm45_vm1, %v129_v3 }
  0xc9   :  { %v83_v5 = vpop.f32.mrf.mxu0 }
  0xca   :  { %v84_v6 = vadd.f32 %v105_v4, %v83_v5 }
  0xcb   :  { %v123_v7 = vpop.f32.mrf.mxu0 }
  0xcc   :  { %v112_v8 = vpack.c.bf16 %v84_v6, %v84_v6 }
  0xcd   :  { %v86_v9 = vpop.f32.mrf.mxu0 }
  0xce   :  { %99 = vst.msk [vmem:[%s173_s3] sm:$0xf] %vm98_vm2, %v112_v8  ;;  %v87_v10 = vadd.f32 %v105_v4, %v86_v9 }
  0xcf   :  { %v124_v11 = vpop.f32.mrf.mxu0 }
  0xd0   :  { %v113_v12 = vpack.c.bf16 %v87_v10, %v87_v10 }
  0xd2   :  { %100 = vst.msk [vmem:[%s173_s3 + $0x4] sm:$0xf] %vm98_vm2, %v113_v12 }

// kernel: bert_forward.13
= control target key start
LH: loop header
LB: loop body
LE: loop exit
PB: predicated region body
PF: predicated region fallthrough
CT: control target
= control target key end

     0   :  { %vm18_vm0 = vcmask 261120   ;;  %vm72_vm1 = vcmask 257024   ;;  %s132_s0 = inlined_call_operand.vmem [shape: bf16[16,32], index: 0, kind: input, shape index: {}]   ;;  %s133_s1 = inlined_call_operand.vmem [shape: f32[1,32], index: 1, kind: input, shape index: {}]   ;;  %s134_s2 = inlined_call_operand.vmem [shape: f32[1,32], index: 2, kind: input, shape index: {}]   ;;  %s135_s3 = inlined_call_operand.vmem [shape: bf16[16,32], index: 3, kind: output, shape index: {}]  }
   0x1   :  { %v86_v0 = vld [vmem:[%s132_s0] sm:$0xff]  }
   0x2   :  { %v87_v1 = vunpack.c.l.bf16 %v86_v0  ;;  %v88_v2 = vunpack.c.h.bf16 %v86_v0  ;;  %v79_v22 = vld [vmem:[%s133_s1] ss:$0 sm:$0xff] }
   0x3   :  { %v80_v24 = vld [vmem:[%s134_s2] ss:$0 sm:$0xff] }
   0x4   :  { %v19_v3 = vsel %vm18_vm0, %v87_v1, 0.0  ;;  %v22_v4 = vsel %vm18_vm0, %v88_v2, 0.0 }
   0x5   :  { %20 = vadd.xlane.f32.xlu0 %v19_v3 }
   0x9   :  { %23 = vadd.xlane.f32.xlu0 %v22_v4 }
  0x8e   :  { %v21_v5 = vpop.xlane.xlu0 %20 }
  0x8f   :  { %v26_v6 = vmul.f32 0.03125, %v21_v5 }
  0x91   :  { %v28_v7 = vsub.f32 %v87_v1, %v26_v6 }
  0x92   :  { %v24_v8 = vpop.xlane.xlu0 %23 }
  0x93   :  { %v27_v9 = vmul.f32 0.03125, %v24_v8  ;;  %v30_v10 = vmul.f32 %v28_v7, %v28_v7 }
  0x95   :  { %v29_v11 = vsub.f32 %v88_v2, %v27_v9  ;;  %v32_v12 = vsel %vm18_vm0, %v30_v10, 0.0 }
  0x96   :  { %33 = vadd.xlane.f32.xlu1 %v32_v12 }
  0x97   :  { %v31_v13 = vmul.f32 %v29_v11, %v29_v11 }
  0x99   :  { %v35_v14 = vsel %vm18_vm0, %v31_v13, 0.0 }
  0x9a   :  { %36 = vadd.xlane.f32.xlu1 %v35_v14 }
 0x11f   :  { %v34_v15 = vpop.xlane.xlu1 %33 }
 0x120   :  { %v38_v16 = vmul.f32 0.03125, %v34_v15 }
 0x122   :  { %v40_v17 = vadd.f32 1e-05, %v38_v16 }
 0x123   :  { %v37_v18 = vpop.xlane.xlu1 %36 }
 0x124   :  { %89 = vrsqrt.f32 %v40_v17  ;;  %v39_v19 = vmul.f32 0.03125, %v37_v18 }
 0x126   :  { %v41_v20 = vadd.f32 1e-05, %v39_v19 }
 0x128   :  { %91 = vrsqrt.f32 %v41_v20 }
 0x131   :  { %v90_v21 = vpop.eup %89 }
 0x132   :  { %v44_v23 = vmul.f32 %v90_v21, %v28_v7 }
 0x134   :  { %v53_v25 = vmul.f32 %v79_v22, %v44_v23 }
 0x135   :  { %v92_v26 = vpop.eup %91 }
 0x136   :  { %v62_v27 = vadd.f32 %v80_v24, %v53_v25  ;;  %v45_v28 = vmul.f32 %v92_v26, %v29_v11 }
 0x138   :  { %v83_v29 = vpack.c.bf16 %v62_v27, %v62_v27  ;;  %v54_v30 = vmul.f32 %v79_v22, %v45_v28 }
 0x13a   :  { %73 = vst.msk [vmem:[%s135_s3] sm:$0xf] %vm72_vm1, %v83_v29  ;;  %v63_v31 = vadd.f32 %v80_v24, %v54_v30 }
 0x13c   :  { %v84_v32 = vpack.c.bf16 %v63_v31, %v63_v31 }
 0x13e   :  { %74 = vst.msk [vmem:[%s135_s3 + $0x4] sm:$0xf] %vm72_vm1, %v84_v32 }

// kernel: bert_forward.16
= control target key start
LH: loop header
LB: loop body
LE: loop exit
PB: predicated region body
PF: predicated region fallthrough
CT: control target
= control target key end

     0   :  { %v200_v0 = vmov 0.0   ;;  %vm201_vm0 = vmmov 0   ;;  %vm54_vm1 = vcmask 261120   ;;  %vm158_vm2 = vcmask 257024   ;;  %s269_s1 = inlined_call_operand.vmem [shape: bf16[32,32], index: 1, kind: input, shape index: {}]   ;;  %s270_s0 = inlined_call_operand.vmem [shape: bf16[16,32], index: 0, kind: input, shape index: {}]   ;;  %s271_s3 = inlined_call_operand.vmem [shape: bf16[16,32], index: 3, kind: input, shape index: {}]   ;;  %s272_s2 = inlined_call_operand.vmem [shape: f32[1,32], index: 2, kind: input, shape index: {}]   ;;  %s273_s4 = inlined_call_operand.vmem [shape: f32[1,32], index: 4, kind: input, shape index: {}]   ;;  %s274_s5 = inlined_call_operand.vmem [shape: f32[1,32], index: 5, kind: input, shape index: {}]   ;;  %s275_s6 = inlined_call_operand.vmem [shape: bf16[16,32], index: 6, kind: output, shape index: {}]  }
   0x1   :  { %183 = vmatprep.subr.bf16.mxu0 %v200_v0  ;;  %v193_v1 = vld [vmem:[%s269_s1 + $0x8] sm:$0xff]   ;;  %187 = vmatprep.mubr.msk.bf16.mxu0 %vm201_vm0, %v200_v0  ;;  %v194_v2 = vld [vmem:[%s269_s1] sm:$0xff]  }
   0x2   :  { %184 = vmatpush3.bf16.msra.mxu0 %v193_v1  ;;  %v195_v3 = vld [vmem:[%s270_s0] sm:$0xff]  }
   0x3   :  { %185 = vmatprep.subr.bf16.mxu0 %v200_v0  ;;  %v177_v4 = vld [vmem:[%s271_s3] sm:$0xff]  }
   0x4   :  { %v165_v5 = vld [vmem:[%s272_s2] ss:$0 sm:$0xff]  ;;  %v178_v6 = vunpack.c.l.bf16 %v177_v4  ;;  %v179_v11 = vunpack.c.h.bf16 %v177_v4 }
   0x5   :  { %v170_v35 = vld [vmem:[%s273_s4] ss:$0 sm:$0xff] }
   0x6   :  { %186 = vmatpush3.bf16.msra.mxu0 %v194_v2  ;;  %v171_v37 = vld [vmem:[%s274_s5] ss:$0 sm:$0xff] }
   0x9   :  { %188 = vmatmul.mubr.msk.bf16.vlgmr.msra.gmra.mxu0 %vm54_vm1, %v195_v3 }
  0xc9   :  { %v92_v7 = vpop.f32.mrf.mxu0 }
  0xca   :  { %v93_v8 = vadd.f32 %v165_v5, %v92_v7 }
  0xcb   :  { %v189_v9 = vpop.f32.mrf.mxu0 }
  0xcc   :  { %v103_v10 = vadd.f32 %v178_v6, %v93_v8 }
  0xcd   :  { %v95_v12 = vpop.f32.mrf.mxu0 }
  0xce   :  { %v96_v13 = vadd.f32 %v165_v5, %v95_v12  ;;  %v105_v14 = vsel %vm54_vm1, %v103_v10, 0.0 }
  0xcf   :  { %106 = vadd.xlane.f32.xlu0 %v105_v14  ;;  %v190_v15 = vpop.f32.mrf.mxu0 }
  0xd0   :  { %v104_v16 = vadd.f32 %v179_v11, %v96_v13 }
  0xd2   :  { %v108_v17 = vsel %vm54_vm1, %v104_v16, 0.0 }
  0xd3   :  { %109 = vadd.xlane.f32.xlu0 %v108_v17 }
 0x158   :  { %v107_v18 = vpop.xlane.xlu0 %106 }
 0x159   :  { %v112_v19 = vmul.f32 0.03125, %v107_v18 }
 0x15b   :  { %v114_v20 = vsub.f32 %v103_v10, %v112_v19 }
 0x15c   :  { %v110_v21 = vpop.xlane.xlu0 %109 }
 0x15d   :  { %v113_v22 = vmul.f32 0.03125, %v110_v21  ;;  %v116_v23 = vmul.f32 %v114_v20, %v114_v20 }
 0x15f   :  { %v115_v24 = vsub.f32 %v104_v16, %v113_v22  ;;  %v118_v25 = vsel %vm54_vm1, %v116_v23, 0.0 }
 0x160   :  { %119 = vadd.xlane.f32.xlu1 %v118_v25 }
 0x161   :  { %v117_v26 = vmul.f32 %v115_v24, %v115_v24 }
 0x163   :  { %v121_v27 = vsel %vm54_vm1, %v117_v26, 0.0 }
 0x164   :  { %122 = vadd.xlane.f32.xlu1 %v121_v27 }
 0x1e9   :  { %v120_v28 = vpop.xlane.xlu1 %119 }
 0x1ea   :  { %v124_v29 = vmul.f32 0.03125, %v120_v28 }
 0x1ec   :  { %v126_v30 = vadd.f32 1e-05, %v124_v29 }
 0x1ed   :  { %v123_v31 = vpop.xlane.xlu1 %122 }
 0x1ee   :  { %196 = vrsqrt.f32 %v126_v30  ;;  %v125_v32 = vmul.f32 0.03125, %v123_v31 }
 0x1f0   :  { %v127_v33 = vadd.f32 1e-05, %v125_v32 }
 0x1f2   :  { %198 = vrsqrt.f32 %v127_v33 }
 0x1fb   :  { %v197_v34 = vpop.eup %196 }
 0x1fc   :  { %v130_v36 = vmul.f32 %v197_v34, %v114_v20 }
 0x1fe   :  { %v139_v38 = vmul.f32 %v170_v35, %v130_v36 }
 0x1ff   :  { %v199_v39 = vpop.eup %198 }
 0x200   :  { %v148_v40 = vadd.f32 %v171_v37, %v139_v38  ;;  %v131_v41 = vmul.f32 %v199_v39, %v115_v24 }
 0x202   :  { %v174_v42 = vpack.c.bf16 %v148_v40, %v148_v40  ;;  %v140_v43 = vmul.f32 %v170_v35, %v131_v41 }
 0x204   :  { %159 = vst.msk [vmem:[%s275_s6] sm:$0xf] %vm158_vm2, %v174_v42  ;;  %v149_v44 = vadd.f32 %v171_v37, %v140_v43 }
 0x206   :  { %v175_v45 = vpack.c.bf16 %v149_v44, %v149_v44 }
 0x208   :  { %160 = vst.msk [vmem:[%s275_s6 + $0x4] sm:$0xf] %vm158_vm2, %v175_v45 }

// kernel: bert_forward.15
= control target key start
LH: loop header
LB: loop body
LE: loop exit
PB: predicated region body
PF: predicated region fallthrough
CT: control target
= control target key end

     0   :  { %vm40_vm0 = vcmask 64512   ;;  %v1081_v0 = vmov 0.0   ;;  %vm1082_vm1 = vmmov 0   ;;  %vm500_vm2 = vcmask 1043456   ;;  %s1344_s1 = inlined_call_operand.vmem [shape: bf16[8,8,8], index: 1, kind: input, shape index: {}]   ;;  %s1345_s0 = inlined_call_operand.vmem [shape: bf16[8,8,8], index: 0, kind: input, shape index: {}]   ;;  %s1346_s2 = inlined_call_operand.vmem [shape: bf16[8,8,8], index: 2, kind: input, shape index: {}]   ;;  %s1347_s3 = inlined_call_operand.vmem [shape: bf16[8,8,8], index: 3, kind: output, shape index: {}]  }
   0x1   :  { %951 = vmatprep.subr.bf16.mxu0 %v1081_v0  ;;  %957 = vmatprep.subr.bf16.mxu1 %v1081_v0  ;;  %v32_v1 = vld [vmem:[%s1344_s1] sm:$0xf]  ;;  %v33_v2 = vld [vmem:[%s1344_s1 + $0x4] sm:$0xf]  ;;  %v34_v7 = vld [vmem:[%s1344_s1 + $0x8] sm:$0xf] }
   0x2   :  { %v45_v3 = vsel %vm40_vm0, %v32_v1, 0  ;;  %v91_v4 = vsel %vm40_vm0, %v33_v2, 0  ;;  %953 = vmatprep.mubr.msk.bf16.mxu0 %vm1082_vm1, %v1081_v0  ;;  %959 = vmatprep.mubr.msk.bf16.mxu1 %vm1082_vm1, %v1081_v0  ;;  %v16_v5 = vld [vmem:[%s1345_s0] sm:$0xf]  ;;  %v17_v6 = vld [vmem:[%s1345_s0 + $0x4] sm:$0xf] }
   0x3   :  { %952 = vmatpush3.bf16.xpose.msra.mxu0 %v45_v3  ;;  %958 = vmatpush3.bf16.xpose.msra.mxu1 %v91_v4  ;;  %v35_v8 = vld [vmem:[%s1344_s1 + $0xc] sm:$0xf]  ;;  %v24_v9 = vmul.bf16 1052065461, %v16_v5  ;;  %v25_v10 = vmul.bf16 1052065461, %v17_v6 }
   0x4   :  { %963 = vmatprep.subr.bf16.mxu0 %v1081_v0  ;;  %969 = vmatprep.subr.bf16.mxu1 %v1081_v0  ;;  %v137_v11 = vsel %vm40_vm0, %v34_v7, 0  ;;  %v183_v12 = vsel %vm40_vm0, %v35_v8, 0  ;;  %v18_v13 = vld [vmem:[%s1345_s0 + $0x8] sm:$0xf]  ;;  %v19_v14 = vld [vmem:[%s1345_s0 + $0xc] sm:$0xf] }
   0x5   :  { %v36_v15 = vld [vmem:[%s1344_s1 + $0x10] sm:$0xf]  ;;  %v37_v16 = vld [vmem:[%s1344_s1 + $0x14] sm:$0xf]  ;;  %v26_v17 = vmul.bf16 1052065461, %v18_v13 }
   0x6   :  { %v27_v18 = vmul.bf16 1052065461, %v19_v14  ;;  %v229_v19 = vsel %vm40_vm0, %v36_v15, 0  ;;  %v275_v20 = vsel %vm40_vm0, %v37_v16, 0  ;;  %v20_v21 = vld [vmem:[%s1345_s0 + $0x10] sm:$0xf] }
   0x7   :  { %v21_v22 = vld [vmem:[%s1345_s0 + $0x14] sm:$0xf]  ;;  %v38_v23 = vld [vmem:[%s1344_s1 + $0x18] sm:$0xf]  ;;  %v39_v24 = vld [vmem:[%s1344_s1 + $0x1c] sm:$0xf] }
   0x8   :  { %v28_v25 = vmul.bf16 1052065461, %v20_v21  ;;  %v29_v26 = vmul.bf16 1052065461, %v21_v22  ;;  %v321_v27 = vsel %vm40_vm0, %v38_v23, 0  ;;  %v367_v28 = vsel %vm40_vm0, %v39_v24, 0 }
   0x9   :  { %v22_v29 = vld [vmem:[%s1345_s0 + $0x18] sm:$0xf]  ;;  %v23_v30 = vld [vmem:[%s1345_s0 + $0x1c] sm:$0xf]  ;;  %v489_v8 = vld [vmem:[%s1346_s2] sm:$0xf] }
   0xa   :  { %954 = vmatmul.mubr.msk.bf16.vlgmr.msra.gmra.mxu0 %vm40_vm0, %v24_v9  ;;  %960 = vmatmul.mubr.msk.bf16.vlgmr.msra.gmra.mxu1 %vm40_vm0, %v25_v10  ;;  %v30_v31 = vmul.bf16 1052065461, %v22_v29  ;;  %v31_v32 = vmul.bf16 1052065461, %v23_v30  ;;  %v502_v9 = vsel %vm500_vm2, %v489_v8, 0  ;;  %vm890_vm3 = vcmask 60416  }
   0xb   :  { %964 = vmatpush3.bf16.xpose.msra.mxu0 %v137_v11  ;;  %970 = vmatpush3.bf16.xpose.msra.mxu1 %v183_v12  ;;  %v490_v12 = vld [vmem:[%s1346_s2 + $0x4] sm:$0xf]  ;;  %v491_v14 = vld [vmem:[%s1346_s2 + $0x8] sm:$0xf]  ;;  %v492_v16 = vld [vmem:[%s1346_s2 + $0xc] sm:$0xf] }
   0xc   :  { %965 = vmatprep.mubr.msk.bf16.mxu0 %vm1082_vm1, %v1081_v0  ;;  %971 = vmatprep.mubr.msk.bf16.mxu1 %vm1082_vm1, %v1081_v0  ;;  %v548_v13 = vsel %vm500_vm2, %v490_v12, 0  ;;  %v594_v15 = vsel %vm500_vm2, %v491_v14, 0  ;;  %v495_v22 = vld [vmem:[%s1346_s2 + $0x18] sm:$0xf]  ;;  %v496_v23 = vld [vmem:[%s1346_s2 + $0x1c] sm:$0xf] }
   0xd   :  { %975 = vmatprep.subr.bf16.mxu0 %v1081_v0  ;;  %981 = vmatprep.subr.bf16.mxu1 %v1081_v0  ;;  %v1264_v24 = vsel %vm500_vm2, %v495_v22, 0 }
  0x12   :  { %966 = vmatmul.mubr.msk.bf16.vlgmr.msra.gmra.mxu0 %vm40_vm0, %v26_v17  ;;  %972 = vmatmul.mubr.msk.bf16.vlgmr.msra.gmra.mxu1 %vm40_vm0, %v27_v18  ;;  %v640_v17 = vsel %vm500_vm2, %v492_v16, 0  ;;  %v493_v18 = vld [vmem:[%s1346_s2 + $0x10] sm:$0xf] }
  0x13   :  { %976 = vmatpush3.bf16.xpose.msra.mxu0 %v229_v19  ;;  %982 = vmatpush3.bf16.xpose.msra.mxu1 %v275_v20  ;;  %v494_v19 = vld [vmem:[%s1346_s2 + $0x14] sm:$0xf]  ;;  %v686_v20 = vsel %vm500_vm2, %v493_v18, 0 }
  0x14   :  { %977 = vmatprep.mubr.msk.bf16.mxu0 %vm1082_vm1, %v1081_v0  ;;  %983 = vmatprep.mubr.msk.bf16.mxu1 %vm1082_vm1, %v1081_v0  ;;  %v1255_v21 = vsel %vm500_vm2, %v494_v19, 0 }
  0x15   :  { %987 = vmatprep.subr.bf16.mxu0 %v1081_v0  ;;  %993 = vmatprep.subr.bf16.mxu1 %v1081_v0 }
  0x1a   :  { %978 = vmatmul.mubr.msk.bf16.vlgmr.msra.gmra.mxu0 %vm40_vm0, %v28_v25  ;;  %984 = vmatmul.mubr.msk.bf16.vlgmr.msra.gmra.mxu1 %vm40_vm0, %v29_v26  ;;  %v1267_v25 = vsel %vm500_vm2, %v496_v23, 0 }
  0x1b   :  { %988 = vmatpush3.bf16.xpose.msra.mxu0 %v321_v27  ;;  %994 = vmatpush3.bf16.xpose.msra.mxu1 %v367_v28 }
  0x1c   :  { %989 = vmatprep.mubr.msk.bf16.mxu0 %vm1082_vm1, %v1081_v0  ;;  %995 = vmatprep.mubr.msk.bf16.mxu1 %vm1082_vm1, %v1081_v0 }
  0x1d   :  { %999 = vmatprep.subr.bf16.mxu0 %v1081_v0  ;;  %1005 = vmatprep.subr.bf16.mxu1 %v1081_v0 }
  0x22   :  { %990 = vmatmul.mubr.msk.bf16.vlgmr.msra.gmra.mxu0 %vm40_vm0, %v30_v31  ;;  %996 = vmatmul.mubr.msk.bf16.vlgmr.msra.gmra.mxu1 %vm40_vm0, %v31_v32 }
  0x23   :  { %1001 = vmatprep.mubr.msk.bf16.mxu0 %vm1082_vm1, %v1081_v0  ;;  %1007 = vmatprep.mubr.msk.bf16.mxu1 %vm1082_vm1, %v1081_v0 }
  0x24   :  { %1000 = vmatpush3.bf16.msra.mxu0 %v502_v9  ;;  %1006 = vmatpush3.bf16.msra.mxu1 %v548_v13 }
  0x25   :  { %1011 = vmatprep.subr.bf16.mxu0 %v1081_v0  ;;  %1017 = vmatprep.subr.bf16.mxu1 %v1081_v0 }
  0xca   :  { %v1197_v33 = vpop.f32.mrf.mxu0  ;;  %v1199_v34 = vpop.f32.mrf.mxu1 }
  0xcb   :  { %v409_v35 = vsel %vm40_vm0, %v1197_v33, -inf  ;;  %v412_v38 = vsel %vm40_vm0, %v1199_v34, -inf }
  0xcc   :  { %v961_v36 = vpop.f32.mrf.mxu1  ;;  %410 = vmax.xlane.f32.xlu0 %v409_v35  ;;  %v955_v37 = vpop.f32.mrf.mxu0 }
  0xce   :  { %v84_v39 = vpop.f32.mrf.mxu0  ;;  %v130_v40 = vpop.f32.mrf.mxu1 }
  0xd0   :  { %v962_v41 = vpop.f32.mrf.mxu1  ;;  %413 = vmax.xlane.f32.xlu0 %v412_v38  ;;  %v956_v42 = vpop.f32.mrf.mxu0 }
  0xd2   :  { %v1205_v43 = vpop.f32.mrf.mxu0  ;;  %v1207_v44 = vpop.f32.mrf.mxu1 }
  0xd3   :  { %v415_v45 = vsel %vm40_vm0, %v1205_v43, -inf  ;;  %v418_v48 = vsel %vm40_vm0, %v1207_v44, -inf }
  0xd4   :  { %v973_v46 = vpop.f32.mrf.mxu1  ;;  %416 = vmax.xlane.f32.xlu1 %v415_v45  ;;  %v967_v47 = vpop.f32.mrf.mxu0 }
  0xd6   :  { %v176_v49 = vpop.f32.mrf.mxu0  ;;  %v222_v50 = vpop.f32.mrf.mxu1 }
  0xd8   :  { %v974_v51 = vpop.f32.mrf.mxu1  ;;  %419 = vmax.xlane.f32.xlu1 %v418_v48  ;;  %v968_v52 = vpop.f32.mrf.mxu0 }
  0xda   :  { %v1213_v53 = vpop.f32.mrf.mxu0  ;;  %v1215_v54 = vpop.f32.mrf.mxu1 }
  0xdb   :  { %v424_v55 = vsel %vm40_vm0, %v1215_v54, -inf  ;;  %v421_v56 = vsel %vm40_vm0, %v1213_v53, -inf }
  0xdc   :  { %v985_v57 = vpop.f32.mrf.mxu1  ;;  %425 = vmax.xlane.f32.xlu1 %v424_v55  ;;  %422 = vmax.xlane.f32.xlu0 %v421_v56  ;;  %v979_v58 = vpop.f32.mrf.mxu0 }
  0xde   :  { %v268_v59 = vpop.f32.mrf.mxu0  ;;  %v314_v60 = vpop.f32.mrf.mxu1 }
  0xe0   :  { %v980_v61 = vpop.f32.mrf.mxu0  ;;  %v986_v62 = vpop.f32.mrf.mxu1 }
  0xe2   :  { %v1221_v63 = vpop.f32.mrf.mxu0  ;;  %v1223_v1 = vpop.f32.mrf.mxu1 }
  0xe3   :  { %v430_v2 = vsel %vm40_vm0, %v1223_v1, -inf  ;;  %v427_v3 = vsel %vm40_vm0, %v1221_v63, -inf }
  0xe4   :  { %v997_v4 = vpop.f32.mrf.mxu1  ;;  %431 = vmax.xlane.f32.xlu1 %v430_v2  ;;  %428 = vmax.xlane.f32.xlu0 %v427_v3  ;;  %v991_v5 = vpop.f32.mrf.mxu0 }
  0xe6   :  { %v360_v6 = vpop.f32.mrf.mxu0  ;;  %v406_v7 = vpop.f32.mrf.mxu1 }
  0xe8   :  { %v992_v10 = vpop.f32.mrf.mxu0  ;;  %v998_v11 = vpop.f32.mrf.mxu1 }
 0x155   :  { %v411_v26 = vpop.xlane.xlu0 %410 }
 0x156   :  { %v433_v27 = vsub.f32 %v1197_v33, %v411_v26 }
 0x158   :  { %v441_v28 = vmul.f32 1.442695, %v433_v27 }
 0x159   :  { %v414_v29 = vpop.xlane.xlu0 %413 }
 0x15a   :  { %1049 = vpow2.f32 %v441_v28  ;;  %v434_v30 = vsub.f32 %v1199_v34, %v414_v29 }
 0x15c   :  { %v443_v31 = vmul.f32 1.442695, %v434_v30 }
 0x15d   :  { %v417_v32 = vpop.xlane.xlu1 %416 }
 0x15e   :  { %1051 = vpow2.f32 %v443_v31  ;;  %v435_v35 = vsub.f32 %v1205_v43, %v417_v32 }
 0x160   :  { %v445_v36 = vmul.f32 1.442695, %v435_v35 }
 0x161   :  { %v420_v37 = vpop.xlane.xlu1 %419 }
 0x162   :  { %1053 = vpow2.f32 %v445_v36  ;;  %v436_v38 = vsub.f32 %v1207_v44, %v420_v37 }
 0x164   :  { %v447_v39 = vmul.f32 1.442695, %v436_v38 }
 0x165   :  { %v426_v40 = vpop.xlane.xlu1 %425  ;;  %v423_v41 = vpop.xlane.xlu0 %422 }
 0x166   :  { %1055 = vpow2.f32 %v447_v39  ;;  %v438_v33 = vsub.f32 %v1215_v54, %v426_v40  ;;  %v437_v42 = vsub.f32 %v1213_v53, %v423_v41 }
 0x167   :  { %v1050_v45 = vpop.eup %1049 }
 0x168   :  { %v451_v34 = vmul.f32 1.442695, %v438_v33  ;;  %v449_v46 = vmul.f32 1.442695, %v437_v42  ;;  %v457_v47 = vsel %vm40_vm0, %v1050_v45, 0.0  ;;  %v481_v48 = vpack.c.bf16 %v1050_v45, %v1050_v45 }
 0x169   :  { %458 = vadd.xlane.f32.xlu0 %v457_v47 }
 0x16a   :  { %1057 = vpow2.f32 %v451_v34  ;;  %1002 = vmatmul.mubr.msk.bf16.vlgmr.msra.gmra.mxu0 %vm40_vm0, %v481_v48 }
 0x16b   :  { %v1052_v43 = vpop.eup %1051  ;;  %1059 = vpow2.f32 %v449_v46  ;;  %1012 = vmatpush3.bf16.msra.mxu0 %v594_v15  ;;  %1013 = vmatprep.mubr.msk.bf16.mxu0 %vm1082_vm1, %v1081_v0 }
 0x16c   :  { %v460_v44 = vsel %vm40_vm0, %v1052_v43, 0.0  ;;  %v482_v49 = vpack.c.bf16 %v1052_v43, %v1052_v43  ;;  %1023 = vmatprep.subr.bf16.mxu0 %v1081_v0 }
 0x16d   :  { %461 = vadd.xlane.f32.xlu1 %v460_v44  ;;  %v432_v50 = vpop.xlane.xlu1 %431  ;;  %v429_v51 = vpop.xlane.xlu0 %428 }
 0x16e   :  { %v440_v52 = vsub.f32 %v1223_v1, %v432_v50  ;;  %v439_v53 = vsub.f32 %v1221_v63, %v429_v51  ;;  %1008 = vmatmul.mubr.msk.bf16.vlgmr.msra.gmra.mxu1 %vm40_vm0, %v482_v49 }
 0x16f   :  { %v1054_v54 = vpop.eup %1053  ;;  %1018 = vmatpush3.bf16.msra.mxu1 %v640_v17  ;;  %1019 = vmatprep.mubr.msk.bf16.mxu1 %vm1082_vm1, %v1081_v0 }
 0x170   :  { %v455_v55 = vmul.f32 1.442695, %v440_v52  ;;  %v453_v56 = vmul.f32 1.442695, %v439_v53  ;;  %v463_v57 = vsel %vm40_vm0, %v1054_v54, 0.0  ;;  %v483_v58 = vpack.c.bf16 %v1054_v54, %v1054_v54  ;;  %1029 = vmatprep.subr.bf16.mxu1 %v1081_v0 }
 0x171   :  { %464 = vadd.xlane.f32.xlu0 %v463_v57 }
 0x172   :  { %1061 = vpow2.f32 %v455_v55  ;;  %1014 = vmatmul.mubr.msk.bf16.vlgmr.msra.gmra.mxu0 %vm40_vm0, %v483_v58 }
 0x173   :  { %v1056_v59 = vpop.eup %1055  ;;  %1063 = vpow2.f32 %v453_v56  ;;  %1024 = vmatpush3.bf16.msra.mxu0 %v686_v20  ;;  %1025 = vmatprep.mubr.msk.bf16.mxu0 %vm1082_vm1, %v1081_v0 }
 0x174   :  { %v466_v60 = vsel %vm40_vm0, %v1056_v59, 0.0  ;;  %v484_v61 = vpack.c.bf16 %v1056_v59, %v1056_v59  ;;  %1035 = vmatprep.subr.bf16.mxu0 %v1081_v0 }
 0x175   :  { %467 = vadd.xlane.f32.xlu1 %v466_v60 }
 0x176   :  { %1020 = vmatmul.mubr.msk.bf16.vlgmr.msra.gmra.mxu1 %vm40_vm0, %v484_v61 }
 0x177   :  { %v1058_v62 = vpop.eup %1057  ;;  %1030 = vmatpush3.bf16.msra.mxu1 %v1255_v21  ;;  %1031 = vmatprep.mubr.msk.bf16.mxu1 %vm1082_vm1, %v1081_v0 }
 0x178   :  { %v1060_v63 = vpop.eup %1059  ;;  %v472_v1 = vsel %vm40_vm0, %v1058_v62, 0.0  ;;  %1041 = vmatprep.subr.bf16.mxu1 %v1081_v0  ;;  %v486_v4 = vpack.c.bf16 %v1058_v62, %v1058_v62 }
 0x179   :  { %473 = vadd.xlane.f32.xlu1 %v472_v1  ;;  %v469_v2 = vsel %vm40_vm0, %v1060_v63, 0.0  ;;  %v485_v3 = vpack.c.bf16 %v1060_v63, %v1060_v63 }
 0x17a   :  { %470 = vadd.xlane.f32.xlu0 %v469_v2 }
 0x17b   :  { %1026 = vmatmul.mubr.msk.bf16.vlgmr.msra.gmra.mxu0 %vm40_vm0, %v485_v3 }
 0x17c   :  { %1036 = vmatpush3.bf16.msra.mxu0 %v1264_v24  ;;  %1037 = vmatprep.mubr.msk.bf16.mxu0 %vm1082_vm1, %v1081_v0 }
 0x17e   :  { %1032 = vmatmul.mubr.msk.bf16.vlgmr.msra.gmra.mxu1 %vm40_vm0, %v486_v4 }
 0x17f   :  { %v1062_v5 = vpop.eup %1061  ;;  %1042 = vmatpush3.bf16.msra.mxu1 %v1267_v25  ;;  %1043 = vmatprep.mubr.msk.bf16.mxu1 %vm1082_vm1, %v1081_v0 }
 0x180   :  { %v1064_v6 = vpop.eup %1063  ;;  %v478_v7 = vsel %vm40_vm0, %v1062_v5, 0.0  ;;  %v488_v10 = vpack.c.bf16 %v1062_v5, %v1062_v5 }
 0x181   :  { %479 = vadd.xlane.f32.xlu1 %v478_v7  ;;  %v475_v8 = vsel %vm40_vm0, %v1064_v6, 0.0  ;;  %v487_v9 = vpack.c.bf16 %v1064_v6, %v1064_v6 }
 0x182   :  { %476 = vadd.xlane.f32.xlu0 %v475_v8 }
 0x183   :  { %1038 = vmatmul.mubr.msk.bf16.vlgmr.msra.gmra.mxu0 %vm40_vm0, %v487_v9 }
 0x186   :  { %1044 = vmatmul.mubr.msk.bf16.vlgmr.msra.gmra.mxu1 %vm40_vm0, %v488_v10 }
 0x1f2   :  { %v459_v11 = vpop.xlane.xlu0 %458 }
 0x1f3   :  { %1065 = vrcp.f32 %v459_v11 }
 0x1f6   :  { %v462_v12 = vpop.xlane.xlu1 %461 }
 0x1f7   :  { %1067 = vrcp.f32 %v462_v12 }
 0x1fa   :  { %v465_v13 = vpop.xlane.xlu0 %464 }
 0x1fb   :  { %1069 = vrcp.f32 %v465_v13 }
 0x1fe   :  { %v468_v0 = vpop.xlane.xlu1 %467 }
 0x1ff   :  { %1071 = vrcp.f32 %v468_v0 }
 0x200   :  { %v1066_v14 = vpop.eup %1065 }
 0x202   :  { %v474_v19 = vpop.xlane.xlu1 %473 }
 0x203   :  { %v471_v16 = vpop.xlane.xlu0 %470 }
 0x204   :  { %v1068_v21 = vpop.eup %1067  ;;  %1073 = vrcp.f32 %v471_v16 }
 0x205   :  { %1075 = vrcp.f32 %v474_v19 }
 0x208   :  { %v1070_v28 = vpop.eup %1069 }
 0x20a   :  { %v480_v37 = vpop.xlane.xlu1 %479 }
 0x20b   :  { %v477_v31 = vpop.xlane.xlu0 %476 }
 0x20c   :  { %v1072_v39 = vpop.eup %1071  ;;  %1077 = vrcp.f32 %v477_v31 }
 0x20d   :  { %1079 = vrcp.f32 %v480_v37 }
 0x211   :  { %v1074_v47 = vpop.eup %1073 }
 0x212   :  { %v1076_v50 = vpop.eup %1075 }
 0x219   :  { %v1078_v59 = vpop.eup %1077 }
 0x21a   :  { %v1080_v1 = vpop.eup %1079 }
 0x22a   :  { %v538_v15 = vpop.f32.mrf.mxu0 }
 0x22b   :  { %v867_v17 = vmul.f32 %v1066_v14, %v538_v15 }
 0x22c   :  { %v1003_v18 = vpop.f32.mrf.mxu0 }
 0x22d   :  { %v882_v20 = vpack.c.bf16 %v867_v17, %v867_v17 }
 0x22e   :  { %v541_v22 = vpop.f32.mrf.mxu0  ;;  %v584_v23 = vpop.f32.mrf.mxu1 }
 0x22f   :  { %891 = vst.msk [vmem:[%s1347_s3] sm:$0xf] %vm890_vm3, %v882_v20  ;;  %v869_v24 = vmul.f32 %v1068_v21, %v584_v23 }
 0x230   :  { %v1004_v25 = vpop.f32.mrf.mxu0  ;;  %v1009_v26 = vpop.f32.mrf.mxu1 }
 0x231   :  { %v883_v27 = vpack.c.bf16 %v869_v24, %v869_v24 }
 0x232   :  { %v587_v29 = vpop.f32.mrf.mxu1  ;;  %v630_v30 = vpop.f32.mrf.mxu0 }
 0x233   :  { %892 = vst.msk [vmem:[%s1347_s3 + $0x4] sm:$0xf] %vm890_vm3, %v883_v27  ;;  %v871_v32 = vmul.f32 %v1070_v28, %v630_v30 }
 0x234   :  { %v1010_v35 = vpop.f32.mrf.mxu1  ;;  %v1015_v36 = vpop.f32.mrf.mxu0 }
 0x235   :  { %v884_v38 = vpack.c.bf16 %v871_v32, %v871_v32 }
 0x236   :  { %v633_v40 = vpop.f32.mrf.mxu0  ;;  %v676_v41 = vpop.f32.mrf.mxu1 }
 0x237   :  { %893 = vst.msk [vmem:[%s1347_s3 + $0x8] sm:$0xf] %vm890_vm3, %v884_v38  ;;  %v873_v33 = vmul.f32 %v1072_v39, %v676_v41 }
 0x238   :  { %v1016_v42 = vpop.f32.mrf.mxu0  ;;  %v1021_v45 = vpop.f32.mrf.mxu1 }
 0x239   :  { %v885_v34 = vpack.c.bf16 %v873_v33, %v873_v33 }
 0x23a   :  { %v679_v46 = vpop.f32.mrf.mxu1 }
 0x23b   :  { %894 = vst.msk [vmem:[%s1347_s3 + $0xc] sm:$0xf] %vm890_vm3, %v885_v34  ;;  %v722_v48 = vpop.f32.mrf.mxu0 }
 0x23c   :  { %v875_v43 = vmul.f32 %v1074_v47, %v722_v48  ;;  %v1022_v44 = vpop.f32.mrf.mxu1 }
 0x23d   :  { %v1027_v49 = vpop.f32.mrf.mxu0 }
 0x23e   :  { %v886_v51 = vpack.c.bf16 %v875_v43, %v875_v43  ;;  %v768_v52 = vpop.f32.mrf.mxu1 }
 0x23f   :  { %v725_v53 = vpop.f32.mrf.mxu0  ;;  %v877_v54 = vmul.f32 %v1076_v50, %v768_v52 }
 0x240   :  { %895 = vst.msk [vmem:[%s1347_s3 + $0x10] sm:$0xf] %vm890_vm3, %v886_v51  ;;  %v1033_v55 = vpop.f32.mrf.mxu1 }
 0x241   :  { %v887_v56 = vpack.c.bf16 %v877_v54, %v877_v54  ;;  %v1028_v57 = vpop.f32.mrf.mxu0 }
 0x242   :  { %v771_v58 = vpop.f32.mrf.mxu1 }
 0x243   :  { %896 = vst.msk [vmem:[%s1347_s3 + $0x14] sm:$0xf] %vm890_vm3, %v887_v56  ;;  %v814_v60 = vpop.f32.mrf.mxu0 }
 0x244   :  { %v879_v61 = vmul.f32 %v1078_v59, %v814_v60  ;;  %v1034_v62 = vpop.f32.mrf.mxu1 }
 0x245   :  { %v1039_v63 = vpop.f32.mrf.mxu0 }
 0x246   :  { %v888_v2 = vpack.c.bf16 %v879_v61, %v879_v61  ;;  %v860_v3 = vpop.f32.mrf.mxu1 }
 0x247   :  { %v817_v4 = vpop.f32.mrf.mxu0  ;;  %v881_v5 = vmul.f32 %v1080_v1, %v860_v3 }
 0x248   :  { %897 = vst.msk [vmem:[%s1347_s3 + $0x18] sm:$0xf] %vm890_vm3, %v888_v2  ;;  %v1045_v6 = vpop.f32.mrf.mxu1 }
 0x249   :  { %v889_v7 = vpack.c.bf16 %v881_v5, %v881_v5  ;;  %v1040_v8 = vpop.f32.mrf.mxu0 }
 0x24a   :  { %v863_v9 = vpop.f32.mrf.mxu1 }
 0x24b   :  { %898 = vst.msk [vmem:[%s1347_s3 + $0x1c] sm:$0xf] %vm890_vm3, %v889_v7 }
 0x24c   :  { %v1046_v10 = vpop.f32.mrf.mxu1 }

// kernel: bert_forward.17
= control target key start
LH: loop header
LB: loop body
LE: loop exit
PB: predicated region body
PF: predicated region fallthrough
CT: control target
= control target key end

     0   :  { %v156_v0 = vmov 0.0   ;;  %vm157_vm0 = vmmov 0   ;;  %vm45_vm1 = vcmask 261120   ;;  %s193_s1 = inlined_call_operand.vmem [shape: bf16[32,128], index: 1, kind: input, shape index: {}]   ;;  %s194_s0 = inlined_call_operand.vmem [shape: bf16[16,32], index: 0, kind: input, shape index: {}]   ;;  %s195_s2 = inlined_call_operand.vmem [shape: f32[1,128], index: 2, kind: input, shape index: {}]   ;;  %s196_s3 = inlined_call_operand.vmem [shape: bf16[16,128], index: 3, kind: output, shape index: {}]  }
   0x1   :  { %139 = vmatprep.subr.bf16.mxu0 %v156_v0  ;;  %v149_v1 = vld [vmem:[%s193_s1 + $0x8] sm:$0xff]   ;;  %143 = vmatprep.mubr.msk.bf16.mxu0 %vm157_vm0, %v156_v0  ;;  %v150_v2 = vld [vmem:[%s193_s1] sm:$0xff]  }
   0x2   :  { %140 = vmatpush3.bf16.msra.mxu0 %v149_v1  ;;  %v151_v3 = vld [vmem:[%s194_s0] sm:$0xff]  }
   0x3   :  { %141 = vmatprep.subr.bf16.mxu0 %v156_v0  ;;  %v122_v4 = vld [vmem:[%s195_s2] ss:$0 sm:$0xff] }
   0x6   :  { %142 = vmatpush3.bf16.msra.mxu0 %v150_v2 }
   0x9   :  { %144 = vmatmul.mubr.msk.bf16.vlgmr.msra.gmra.mxu0 %vm45_vm1, %v151_v3 }
  0xc9   :  { %v83_v5 = vpop.f32.mrf.mxu0 }
  0xca   :  { %v84_v6 = vadd.f32 %v122_v4, %v83_v5 }
  0xcb   :  { %v145_v7 = vpop.f32.mrf.mxu0 }
  0xcc   :  { %v90_v8 = vmul.f32 %v84_v6, %v84_v6 }
  0xcd   :  { %v86_v9 = vpop.f32.mrf.mxu0 }
  0xce   :  { %v92_v10 = vmul.f32 %v90_v8, %v84_v6  ;;  %v87_v11 = vadd.f32 %v122_v4, %v86_v9 }
  0xcf   :  { %v146_v12 = vpop.f32.mrf.mxu0 }
  0xd0   :  { %v94_v13 = vmul.f32 0.044715, %v92_v10  ;;  %v91_v14 = vmul.f32 %v87_v11, %v87_v11 }
  0xd2   :  { %v96_v15 = vadd.f32 %v94_v13, %v84_v6  ;;  %v93_v16 = vmul.f32 %v91_v14, %v87_v11 }
  0xd4   :  { %v98_v17 = vmul.f32 0.7978846, %v96_v15  ;;  %v95_v18 = vmul.f32 0.044715, %v93_v16 }
  0xd6   :  { %152 = vtanh.f32 %v98_v17  ;;  %v97_v19 = vadd.f32 %v95_v18, %v87_v11 }
  0xd8   :  { %v99_v20 = vmul.f32 0.7978846, %v97_v19 }
  0xda   :  { %154 = vtanh.f32 %v99_v20 }
  0xe3   :  { %v153_v21 = vpop.eup %152 }
  0xe4   :  { %v102_v22 = vadd.f32 1.0, %v153_v21 }
  0xe6   :  { %v104_v24 = vmul.f32 0.5, %v102_v22 }
  0xe7   :  { %v155_v23 = vpop.eup %154 }
  0xe8   :  { %v103_v25 = vadd.f32 1.0, %v155_v23  ;;  %v106_v27 = vmul.f32 %v104_v24, %v84_v6 }
  0xea   :  { %v105_v26 = vmul.f32 0.5, %v103_v25 }
  0xec   :  { %v107_v28 = vmul.f32 %v105_v26, %v87_v11 }
  0xee   :  { %v134_v29 = vpack.c.bf16 %v107_v28, %v106_v27 }
  0xf0   :  { %135 = vst [vmem:[%s196_s3] sm:$0xff] %v134_v29  }

// kernel: bert_forward.18
= control target key start
LH: loop header
LB: loop body
LE: loop exit
PB: predicated region body
PF: predicated region fallthrough
CT: control target
= control target key end

     0   :  { %v275_v0 = vmov 0.0   ;;  %vm276_vm0 = vmmov 0   ;;  %vm150_vm1 = vcmask 261120   ;;  %vm204_vm2 = vcmask 257024   ;;  %s361_s1 = inlined_call_operand.vmem [shape: bf16[128,32], index: 1, kind: input, shape index: {}]   ;;  %s362_s0 = inlined_call_operand.vmem [shape: bf16[16,128], index: 0, kind: input, shape index: {}]   ;;  %s363_s3 = inlined_call_operand.vmem [shape: bf16[16,32], index: 3, kind: input, shape index: {}]   ;;  %s364_s2 = inlined_call_operand.vmem [shape: f32[1,32], index: 2, kind: input, shape index: {}]   ;;  %s365_s4 = inlined_call_operand.vmem [shape: f32[1,32], index: 4, kind: input, shape index: {}]   ;;  %s366_s5 = inlined_call_operand.vmem [shape: f32[1,32], index: 5, kind: input, shape index: {}]   ;;  %s367_s6 = inlined_call_operand.vmem [shape: bf16[16,32], index: 6, kind: output, shape index: {}]  }
   0x1   :  { %240 = vmatprep.subr.bf16.mxu0 %v275_v0  ;;  %v262_v1 = vld [vmem:[%s361_s1 + $0x38] sm:$0xff]   ;;  %256 = vmatprep.mubr.msk.bf16.mxu0 %vm276_vm0, %v275_v0  ;;  %v263_v2 = vld [vmem:[%s361_s1 + $0x30] sm:$0xff]   ;;  %v264_v3 = vld [vmem:[%s361_s1 + $0x28] sm:$0xff]  }
   0x2   :  { %241 = vmatpush3.bf16.msra.mxu0 %v262_v1  ;;  %v265_v4 = vld [vmem:[%s361_s1 + $0x20] sm:$0xff]   ;;  %v266_v5 = vld [vmem:[%s361_s1 + $0x18] sm:$0xff]   ;;  %v267_v6 = vld [vmem:[%s361_s1 + $0x10] sm:$0xff]  }
   0x3   :  { %242 = vmatprep.subr.bf16.mxu0 %v275_v0  ;;  %v268_v7 = vld [vmem:[%s361_s1 + $0x8] sm:$0xff]   ;;  %v269_v8 = vld [vmem:[%s361_s1] sm:$0xff]  }
   0x4   :  { %v270_v9 = vld [vmem:[%s362_s0] sm:$0xff]  }
   0x5   :  { %v228_v10 = vld [vmem:[%s363_s3] sm:$0xff]  }
   0x6   :  { %243 = vmatpush3.bf16.msra.mxu0 %v263_v2  ;;  %v211_v11 = vld [vmem:[%s364_s2] ss:$0 sm:$0xff]  ;;  %v229_v12 = vunpack.c.l.bf16 %v228_v10  ;;  %v230_v17 = vunpack.c.h.bf16 %v228_v10 }
   0x7   :  { %244 = vmatprep.subr.bf16.mxu0 %v275_v0  ;;  %v221_v41 = vld [vmem:[%s365_s4] ss:$0 sm:$0xff] }
   0x8   :  { %v222_v43 = vld [vmem:[%s366_s5] ss:$0 sm:$0xff] }
   0xa   :  { %245 = vmatpush3.bf16.msra.mxu0 %v264_v3 }
   0xb   :  { %246 = vmatprep.subr.bf16.mxu0 %v275_v0 }
   0xe   :  { %247 = vmatpush3.bf16.msra.mxu0 %v265_v4 }
   0xf   :  { %248 = vmatprep.subr.bf16.mxu0 %v275_v0 }
  0x12   :  { %249 = vmatpush3.bf16.msra.mxu0 %v266_v5 }
  0x13   :  { %250 = vmatprep.subr.bf16.mxu0 %v275_v0 }
  0x16   :  { %251 = vmatpush3.bf16.msra.mxu0 %v267_v6 }
  0x17   :  { %252 = vmatprep.subr.bf16.mxu0 %v275_v0 }
  0x1a   :  { %253 = vmatpush3.bf16.msra.mxu0 %v268_v7 }
  0x1b   :  { %254 = vmatprep.subr.bf16.mxu0 %v275_v0 }
  0x1e   :  { %255 = vmatpush3.bf16.msra.mxu0 %v269_v8 }
  0x21   :  { %257 = vmatmul.mubr.bf16.vlgmr.msra.gmra.mxu0 %v270_v9 }
  0xe1   :  { %v137_v13 = vpop.f32.mrf.mxu0 }
  0xe2   :  { %v138_v14 = vadd.f32 %v211_v11, %v137_v13 }
  0xe3   :  { %v258_v15 = vpop.f32.mrf.mxu0 }
  0xe4   :  { %v148_v16 = vadd.f32 %v229_v12, %v138_v14 }
  0xe5   :  { %v140_v18 = vpop.f32.mrf.mxu0 }
  0xe6   :  { %v141_v19 = vadd.f32 %v211_v11, %v140_v18  ;;  %v151_v20 = vsel %vm150_vm1, %v148_v16, 0.0 }
  0xe7   :  { %152 = vadd.xlane.f32.xlu0 %v151_v20  ;;  %v259_v21 = vpop.f32.mrf.mxu0 }
  0xe8   :  { %v149_v22 = vadd.f32 %v230_v17, %v141_v19 }
  0xea   :  { %v154_v23 = vsel %vm150_vm1, %v149_v22, 0.0 }
  0xeb   :  { %155 = vadd.xlane.f32.xlu0 %v154_v23 }
 0x170   :  { %v153_v24 = vpop.xlane.xlu0 %152 }
 0x171   :  { %v158_v25 = vmul.f32 0.03125, %v153_v24 }
 0x173   :  { %v160_v26 = vsub.f32 %v148_v16, %v158_v25 }
 0x174   :  { %v156_v27 = vpop.xlane.xlu0 %155 }
 0x175   :  { %v159_v28 = vmul.f32 0.03125, %v156_v27  ;;  %v162_v29 = vmul.f32 %v160_v26, %v160_v26 }
 0x177   :  { %v161_v30 = vsub.f32 %v149_v22, %v159_v28  ;;  %v164_v31 = vsel %vm150_vm1, %v162_v29, 0.0 }
 0x178   :  { %165 = vadd.xlane.f32.xlu1 %v164_v31 }
 0x179   :  { %v163_v32 = vmul.f32 %v161_v30, %v161_v30 }
 0x17b   :  { %v167_v33 = vsel %vm150_vm1, %v163_v32, 0.0 }
 0x17c   :  { %168 = vadd.xlane.f32.xlu1 %v167_v33 }
 0x201   :  { %v166_v34 = vpop.xlane.xlu1 %165 }
 0x202   :  { %v170_v35 = vmul.f32 0.03125, %v166_v34 }
 0x204   :  { %v172_v36 = vadd.f32 1e-05, %v170_v35 }
 0x205   :  { %v169_v37 = vpop.xlane.xlu1 %168 }
 0x206   :  { %271 = vrsqrt.f32 %v172_v36  ;;  %v171_v38 = vmul.f32 0.03125, %v169_v37 }
 0x208   :  { %v173_v39 = vadd.f32 1e-05, %v171_v38 }
 0x20a   :  { %273 = vrsqrt.f32 %v173_v39 }
 0x213   :  { %v272_v40 = vpop.eup %271 }
 0x214   :  { %v176_v42 = vmul.f32 %v272_v40, %v160_v26 }
 0x216   :  { %v185_v44 = vmul.f32 %v221_v41, %v176_v42 }
 0x217   :  { %v274_v45 = vpop.eup %273 }
 0x218   :  { %v194_v46 = vadd.f32 %v222_v43, %v185_v44  ;;  %v177_v47 = vmul.f32 %v274_v45, %v161_v30 }
 0x21a   :  { %v225_v48 = vpack.c.bf16 %v194_v46, %v194_v46  ;;  %v186_v49 = vmul.f32 %v221_v41, %v177_v47 }
 0x21c   :  { %205 = vst.msk [vmem:[%s367_s6] sm:$0xf] %vm204_vm2, %v225_v48  ;;  %v195_v50 = vadd.f32 %v222_v43, %v186_v49 }
 0x21e   :  { %v226_v51 = vpack.c.bf16 %v195_v50, %v195_v50 }
 0x220   :  { %206 = vst.msk [vmem:[%s367_s6 + $0x4] sm:$0xf] %vm204_vm2, %v226_v51 }

// kernel: bert_forward.25
= control target key start
LH: loop header
LB: loop body
LE: loop exit
PB: predicated region body
PF: predicated region fallthrough
CT: control target
= control target key end

     0   :  { %v57_v0 = vmov 0   ;;  %s115_s1 = inlined_call_operand.vmem [shape: f32[16,1], index: 1, kind: input, shape index: {}]   ;;  %s116_s0 = inlined_call_operand.vmem [shape: bf16[16,512], index: 0, kind: input, shape index: {}]   ;;  %s117_s2 = inlined_call_operand.vmem [shape: f32[16,512], index: 2, kind: output, shape index: {}]  }
   0x1   :  { %56 = vset.pattern.permute.xlu0 %v57_v0  ;;  %v23_v1 = vld [vmem:[%s115_s1] sm:$0xff]  ;;  %v24_v2 = vld [vmem:[%s115_s1 + $0x8] sm:$0xff]  ;;  %v13_v9 = vld [vmem:[%s116_s0 + $0x10] sm:$0xff] }
   0x2   :  { %27 = vperm.xlu0 %56, %v23_v1   ;;  %v11_v3 = vld [vmem:[%s116_s0] sm:$0xff]  ;;  %v12_v4 = vld [vmem:[%s116_s0 + $0x8] sm:$0xff]  ;;  %v14_v10 = vld [vmem:[%s116_s0 + $0x18] sm:$0xff]  ;;  %v19_v12 = vunpack.c.l.bf16 %v13_v9  ;;  %v20_v13 = vunpack.c.h.bf16 %v13_v9 }
   0x3   :  { %v15_v5 = vunpack.c.l.bf16 %v11_v3  ;;  %v16_v6 = vunpack.c.h.bf16 %v11_v3  ;;  %v17_v7 = vunpack.c.l.bf16 %v12_v4  ;;  %v18_v8 = vunpack.c.h.bf16 %v12_v4 }
   0x4   :  { %v21_v14 = vunpack.c.l.bf16 %v14_v10  ;;  %v22_v15 = vunpack.c.h.bf16 %v14_v10 }
   0x6   :  { %32 = vperm.xlu0 %56, %v24_v2  }
  0x7d   :  { %v28_v11 = vpop.permute.xlu0 %27 }
  0x7e   :  { %v35_v16 = vsub.f32 %v15_v5, %v28_v11  ;;  %v36_v17 = vsub.f32 %v16_v6, %v28_v11  ;;  %v37_v18 = vsub.f32 %v17_v7, %v28_v11  ;;  %v38_v19 = vsub.f32 %v18_v8, %v28_v11 }
  0x80   :  { %43 = vst [vmem:[%s117_s2] sm:$0xff] %v35_v16  ;;  %44 = vst [vmem:[%s117_s2 + $0x8] sm:$0xff] %v36_v17 }
  0x81   :  { %45 = vst [vmem:[%s117_s2 + $0x10] sm:$0xff] %v37_v18  ;;  %46 = vst [vmem:[%s117_s2 + $0x18] sm:$0xff] %v38_v19  ;;  %v33_v20 = vpop.permute.xlu0 %32 }
  0x82   :  { %v39_v21 = vsub.f32 %v19_v12, %v33_v20  ;;  %v40_v22 = vsub.f32 %v20_v13, %v33_v20  ;;  %v41_v23 = vsub.f32 %v21_v14, %v33_v20  ;;  %v42_v24 = vsub.f32 %v22_v15, %v33_v20 }
  0x84   :  { %47 = vst [vmem:[%s117_s2 + $0x20] sm:$0xff] %v39_v21  ;;  %48 = vst [vmem:[%s117_s2 + $0x28] sm:$0xff] %v40_v22 }
  0x85   :  { %49 = vst [vmem:[%s117_s2 + $0x30] sm:$0xff] %v41_v23  ;;  %50 = vst [vmem:[%s117_s2 + $0x38] sm:$0xff] %v42_v24 }

// kernel: bert_forward.24
= control target key start
LH: loop header
LB: loop body
LE: loop exit
PB: predicated region body
PF: predicated region fallthrough
CT: control target
= control target key end

     0   :  { %v388_v1 = vmov 0   ;;  %vm103_vm0 = vcmask 261120   ;;  %vm21_vm1 = vcmask 7168   ;;  %v389_v10 = vmov -inf   ;;  %s474_s1 = inlined_call_operand.vmem [shape: bf16[32,512], index: 1, kind: input, shape index: {}]   ;;  %s475_s0 = inlined_call_operand.vmem [shape: bf16[16,32], index: 0, kind: input, shape index: {}]   ;;  %s476_s2 = inlined_call_operand.vmem [shape: f32[1,512], index: 2, kind: input, shape index: {}]   ;;  %s477_s3 = inlined_call_operand.vmem [shape: bf16[16,512], index: 3, kind: output, shape index: {0}]   ;;  %s478_s4 = inlined_call_operand.vmem [shape: f32[16,1], index: 4, kind: output, shape index: {1}]  }
   0x1   :  { %v351_v0 = vld [vmem:[%s474_s1 + $0x24] ss:$16 sps:$4 sm:$0xff]   ;;  %139 = vmatprep.mubr.bf16.mxu0 %v388_v1  ;;  %182 = vmatprep.mubr.bf16.mxu1 %v388_v1  ;;  %v353_v2 = vld [vmem:[%s474_s1 + $0x2c] ss:$16 sps:$4 sm:$0xff]   ;;  %v355_v3 = vld [vmem:[%s474_s1 + $0x20] ss:$16 sps:$4 sm:$0xff]   ;;  %v38_v11 = vlaneseq }
   0x2   :  { %349 = vset.pattern.permute.xlu1 %v388_v1  ;;  %350 = vset.pattern.permute.xlu0 %v388_v1  ;;  %v356_v4 = vld [vmem:[%s474_s1 + $0x28] ss:$16 sps:$4 sm:$0xff]   ;;  %v357_v5 = vld [vmem:[%s474_s1 + $0x4] ss:$16 sps:$4 sm:$0xff]   ;;  %v359_v6 = vld [vmem:[%s474_s1 + $0xc] ss:$16 sps:$4 sm:$0xff]  }
   0x3   :  { %119 = vmatprep.subr.bf16.mxu0 %v351_v0  ;;  %162 = vmatprep.subr.bf16.mxu1 %v353_v2  ;;  %v361_v7 = vld [vmem:[%s474_s1] ss:$16 sps:$4 sm:$0xff]   ;;  %v362_v8 = vld [vmem:[%s474_s1 + $0x8] ss:$16 sps:$4 sm:$0xff]   ;;  %22 = vst.msk [vmem:[#allocation2] sm:$0xff] %vm21_vm1, %v389_v10  ;;  %23 = vst.msk [vmem:[#allocation2 + $0x8] sm:$0xff] %vm21_vm1, %v389_v10 }
   0x4   :  { %120 = vmatpush1.bf16.msra.mxu0 %v355_v3  ;;  %163 = vmatpush1.bf16.msra.mxu1 %v356_v4  ;;  %v363_v9 = vld [vmem:[%s475_s0] sm:$0xff]   ;;  %v39_v12 = vshrl.u32 %v38_v11, 7  ;;  %v390_v60 = vmov 0.0  }
   0x5   :  { %121 = vmatprep.subr.bf16.mxu0 %v357_v5  ;;  %164 = vmatprep.subr.bf16.mxu1 %v359_v6  ;;  %v36_v17 = vld [vmem:[%s476_s2] sm:$0xf]  ;;  %24 = vst.msk [vmem:[#allocation3] sm:$0xff] %vm21_vm1, %v390_v60  ;;  %25 = vst.msk [vmem:[#allocation3 + $0x8] sm:$0xff] %vm21_vm1, %v390_v60 }
   0x6   :  { %v40_v13 = vsub.s32 0, %v39_v12  ;;  %v48_v14 = vsub.s32 2, %v39_v12  ;;  %v44_v15 = vsub.s32 1, %v39_v12  ;;  %v52_v16 = vsub.s32 3, %v39_v12 }
   0x8   :  { %122 = vmatpush1.bf16.msra.mxu0 %v361_v7  ;;  %165 = vmatpush1.bf16.msra.mxu1 %v362_v8  ;;  %v41_v18 = vrot.slane %v36_v17, %v40_v13  ;;  %v49_v19 = vrot.slane %v36_v17, %v48_v14  ;;  %v45_v20 = vrot.slane %v36_v17, %v44_v15 }
   0x9   :  { %v53_v21 = vrot.slane %v36_v17, %v52_v16 }
   0xa   :  { %v229_v61 = vld [vmem:[#allocation2] sm:$0xff]  ;;  %v230_v0 = vld [vmem:[#allocation2 + $0x8] sm:$0xff] }
   0xb   :  { %336 = vmatmul.mubr.msk.bf16.vlgmr.msra.gmra.mxu0 %vm103_vm0, %v363_v9  ;;  %337 = vmatmul.mubr.msk.bf16.vlgmr.msra.gmra.mxu1 %vm103_vm0, %v363_v9 }
  0xcb   :  { %v141_v22 = vpop.f32.mrf.mxu0  ;;  %v184_v23 = vpop.f32.mrf.mxu1 }
  0xcc   :  { %v142_v26 = vadd.f32 %v141_v22, %v41_v18  ;;  %v185_v27 = vadd.f32 %v184_v23, %v49_v19 }
  0xcd   :  { %v143_v24 = vpop.f32.mrf.mxu0  ;;  %v186_v25 = vpop.f32.mrf.mxu1 }
  0xce   :  { %v144_v28 = vadd.f32 %v143_v24, %v45_v20  ;;  %v187_v29 = vadd.f32 %v186_v25, %v53_v21 }
  0xcf   :  { %v145_v30 = vpop.f32.mrf.mxu0  ;;  %v188_v31 = vpop.f32.mrf.mxu1 }
  0xd0   :  { %v342_v32 = vpack.c.bf16 %v144_v28, %v142_v26  ;;  %v343_v33 = vpack.c.bf16 %v187_v29, %v185_v27  ;;  %v146_v34 = vadd.f32 %v145_v30, %v41_v18  ;;  %v189_v35 = vadd.f32 %v188_v31, %v49_v19 }
  0xd1   :  { %v147_v36 = vpop.f32.mrf.mxu0  ;;  %v190_v37 = vpop.f32.mrf.mxu1 }
  0xd2   :  { %217 = vst [vmem:[%s477_s3] sm:$0xff] %v342_v32  ;;  %218 = vst [vmem:[%s477_s3 + $0x8] sm:$0xff] %v343_v33  ;;  %v193_v38 = vpack.c.bf16 %v146_v34, %v142_v26  ;;  %v195_v39 = vpack.c.bf16 %v189_v35, %v185_v27  ;;  %v148_v40 = vadd.f32 %v147_v36, %v45_v20 }
  0xd3   :  { %v191_v41 = vadd.f32 %v190_v37, %v53_v21 }
  0xd4   :  { %v194_v42 = vpack.c.bf16 %v148_v40, %v144_v28  ;;  %v344_v43 = vpack.c.bf16 %v148_v40, %v146_v34  ;;  %v221_v46 = vunpack.c.l.bf16 %v193_v38  ;;  %v223_v47 = vunpack.c.l.bf16 %v195_v39  ;;  %v249_v40 = vld [vmem:[#allocation3] sm:$0xff] }
  0xd5   :  { %v196_v44 = vpack.c.bf16 %v191_v41, %v187_v29  ;;  %v345_v45 = vpack.c.bf16 %v191_v41, %v189_v35  ;;  %v225_v52 = vunpack.c.h.bf16 %v193_v38  ;;  %v227_v53 = vunpack.c.h.bf16 %v195_v39 }
  0xd6   :  { %219 = vst [vmem:[%s477_s3 + $0x10] sm:$0xff] %v344_v43  ;;  %v222_v48 = vunpack.c.l.bf16 %v194_v42  ;;  %v226_v49 = vunpack.c.h.bf16 %v194_v42  ;;  %v231_v54 = vmax.f32 %v221_v46, %v223_v47 }
  0xd7   :  { %220 = vst [vmem:[%s477_s3 + $0x18] sm:$0xff] %v345_v45  ;;  %v228_v50 = vunpack.c.h.bf16 %v196_v44  ;;  %v224_v51 = vunpack.c.l.bf16 %v196_v44  ;;  %v236_v58 = vmax.f32 %v225_v52, %v227_v53  ;;  %v250_v44 = vld [vmem:[#allocation3 + $0x8] sm:$0xff] }
  0xd9   :  { %v232_v55 = vmax.f32 %v222_v48, %v224_v51  ;;  %v237_v57 = vmax.f32 %v226_v49, %v228_v50 }
  0xdb   :  { %v233_v56 = vmax.f32 %v231_v54, %v232_v55  ;;  %v238_v59 = vmax.f32 %v236_v58, %v237_v57 }
  0xdd   :  { %234 = vmax.xlane.f32.xlu0 %v233_v56 }
  0xe1   :  { %239 = vmax.xlane.f32.xlu0 %v238_v59 }
 0x166   :  { %v235_v62 = vpop.xlane.xlu0 %234 }
 0x167   :  { %v241_v63 = vmax.f32 %v229_v61, %v235_v62 }
 0x169   :  { %v243_v1 = vsub.f32 %v229_v61, %v241_v63  ;;  %302 = vst.msk [vmem:[#allocation2] sm:$0xff] %vm21_vm1, %v241_v63  ;;  %255 = vperm.xlu1 %349, %v241_v63  }
 0x16a   :  { %v240_v2 = vpop.xlane.xlu0 %239 }
 0x16b   :  { %v242_v3 = vmax.f32 %v230_v0, %v240_v2  ;;  %v245_v37 = vmul.f32 1.442695, %v243_v1 }
 0x16d   :  { %v244_v4 = vsub.f32 %v230_v0, %v242_v3  ;;  %303 = vst.msk [vmem:[#allocation2 + $0x8] sm:$0xff] %vm21_vm1, %v242_v3  ;;  %260 = vperm.xlu1 %349, %v242_v3  }
 0x16f   :  { %v247_v38 = vmul.f32 1.442695, %v244_v4 }
 0x174   :  { %v308_v57 = vld [vmem:[#allocation2 + $0x8] sm:$0xff] }
 0x1e4   :  { %v256_v5 = vpop.permute.xlu1 %255 }
 0x1e5   :  { %v263_v6 = vsub.f32 %v221_v46, %v256_v5  ;;  %v264_v7 = vsub.f32 %v222_v48, %v256_v5  ;;  %v265_v8 = vsub.f32 %v223_v47, %v256_v5  ;;  %v266_v9 = vsub.f32 %v224_v51, %v256_v5 }
 0x1e7   :  { %v271_v10 = vmul.f32 1.442695, %v263_v6  ;;  %v273_v11 = vmul.f32 1.442695, %v264_v7  ;;  %v275_v12 = vmul.f32 1.442695, %v265_v8 }
 0x1e8   :  { %v277_v13 = vmul.f32 1.442695, %v266_v9  ;;  %v261_v14 = vpop.permute.xlu1 %260 }
 0x1e9   :  { %364 = vpow2.f32 %v271_v10  ;;  %v267_v15 = vsub.f32 %v225_v52, %v261_v14  ;;  %v268_v16 = vsub.f32 %v226_v49, %v261_v14  ;;  %v269_v17 = vsub.f32 %v227_v53, %v261_v14  ;;  %v307_v53 = vld [vmem:[#allocation2] sm:$0xff] }
 0x1ea   :  { %366 = vpow2.f32 %v273_v11  ;;  %v270_v18 = vsub.f32 %v228_v50, %v261_v14 }
 0x1eb   :  { %368 = vpow2.f32 %v275_v12  ;;  %v279_v19 = vmul.f32 1.442695, %v267_v15  ;;  %v281_v20 = vmul.f32 1.442695, %v268_v16  ;;  %v283_v21 = vmul.f32 1.442695, %v269_v17 }
 0x1ec   :  { %370 = vpow2.f32 %v277_v13  ;;  %v285_v22 = vmul.f32 1.442695, %v270_v18 }
 0x1ed   :  { %372 = vpow2.f32 %v279_v19 }
 0x1ee   :  { %374 = vpow2.f32 %v281_v20 }
 0x1ef   :  { %376 = vpow2.f32 %v283_v21 }
 0x1f0   :  { %378 = vpow2.f32 %v285_v22 }
 0x1f1   :  { %380 = vpow2.f32 %v245_v37 }
 0x1f2   :  { %382 = vpow2.f32 %v247_v38 }
 0x1f6   :  { %v365_v23 = vpop.eup %364 }
 0x1f7   :  { %v367_v24 = vpop.eup %366 }
 0x1f8   :  { %v369_v25 = vpop.eup %368  ;;  %v287_v26 = vadd.f32 %v367_v24, %v365_v23 }
 0x1f9   :  { %v371_v27 = vpop.eup %370 }
 0x1fa   :  { %v373_v28 = vpop.eup %372  ;;  %v288_v29 = vadd.f32 %v369_v25, %v287_v26 }
 0x1fb   :  { %v375_v30 = vpop.eup %374 }
 0x1fc   :  { %v289_v31 = vadd.f32 %v371_v27, %v288_v29  ;;  %v292_v32 = vadd.f32 %v375_v30, %v373_v28  ;;  %v377_v33 = vpop.eup %376 }
 0x1fd   :  { %v379_v35 = vpop.eup %378 }
 0x1fe   :  { %290 = vadd.xlane.f32.xlu0 %v289_v31  ;;  %v293_v34 = vadd.f32 %v377_v33, %v292_v32  ;;  %v381_v39 = vpop.eup %380 }
 0x1ff   :  { %v251_v41 = vmul.f32 %v381_v39, %v249_v40  ;;  %v383_v42 = vpop.eup %382 }
 0x200   :  { %v294_v36 = vadd.f32 %v379_v35, %v293_v34  ;;  %v252_v46 = vmul.f32 %v383_v42, %v250_v44 }
 0x202   :  { %295 = vadd.xlane.f32.xlu1 %v294_v36 }
 0x287   :  { %v291_v43 = vpop.xlane.xlu0 %290 }
 0x288   :  { %v297_v45 = vadd.f32 %v291_v43, %v251_v41 }
 0x28a   :  { %300 = vst.msk [vmem:[#allocation3] sm:$0xff] %vm21_vm1, %v297_v45 }
 0x28b   :  { %v296_v47 = vpop.xlane.xlu1 %295 }
 0x28c   :  { %v298_v48 = vadd.f32 %v296_v47, %v252_v46 }
 0x28e   :  { %301 = vst.msk [vmem:[#allocation3 + $0x8] sm:$0xff] %vm21_vm1, %v298_v48 }
 0x291   :  { %v309_v49 = vld [vmem:[#allocation3] sm:$0xff] }
 0x292   :  { %384 = vlog2.f32 %v309_v49 }
 0x295   :  { %v310_v50 = vld [vmem:[#allocation3 + $0x8] sm:$0xff] }
 0x296   :  { %386 = vlog2.f32 %v310_v50 }
 0x29f   :  { %v385_v51 = vpop.eup %384 }
 0x2a0   :  { %v312_v52 = vmul.f32 0.6931472, %v385_v51 }
 0x2a2   :  { %v315_v54 = vadd.f32 %v312_v52, %v307_v53 }
 0x2a3   :  { %v387_v55 = vpop.eup %386 }
 0x2a4   :  { %317 = vst.msk [vmem:[%s478_s4] sm:$0xff] %vm21_vm1, %v315_v54  ;;  %v314_v56 = vmul.f32 0.6931472, %v387_v55 }
 0x2a6   :  { %v316_v58 = vadd.f32 %v314_v56, %v308_v57 }
 0x2a8   :  { %318 = vst.msk [vmem:[%s478_s4 + $0x8] sm:$0xff] %vm21_vm1, %v316_v58 }

</bundles_post_ra>
